<compile_context>
chip_gen: v5e
topology: v5e:2x2
jax: 0.10.0
libtpu: 0.0.40
codegen_flags: <defaults>
</compile_context>

<pallas_src>
import functools

import jax
import jax.numpy as jnp
from jax.experimental import pallas as pl
from jax.experimental.pallas import tpu as pltpu


def _round_up(x: int, m: int) -> int:
    return ((x + m - 1) // m) * m


def _make_mlp_policy_kernel(n_layers: int, ac_dim: int, tanh_in_bf16: bool):
    """Pallas kernel: n_layers of (Linear + Tanh), Linear output, log_softmax."""

    def kernel(obs_ref, wh_ref, bh_ref, wo_ref, bo_ref, out_ref):
        # obs_ref: [block_b, feat_pad] bf16
        # wh_ref : [n_layers, feat_pad, feat_pad] bf16 (stacked hidden weights)
        # bh_ref : [n_layers, 1, feat_pad] f32
        # wo_ref : [feat_pad, ac_pad] bf16
        # bo_ref : [1, ac_pad] f32
        x = obs_ref[...]  # bf16 MXU operands, f32 accumulation below.

        for i in range(n_layers):  # static unroll (n_layers is small)
            h = jnp.dot(x, wh_ref[i], preferred_element_type=jnp.float32)
            h = h + bh_ref[i]
            if tanh_in_bf16:
                # bf16 EUP tanh (v6e/v7x): halves transcendental cost and removes the
                # separate f32->bf16 cast; next matmul needs bf16 input anyway.
                x = jnp.tanh(h.astype(jnp.bfloat16))
            else:
                x = jnp.tanh(h).astype(jnp.bfloat16)

        logits = jnp.dot(x, wo_ref[...], preferred_element_type=jnp.float32)
        logits = logits + bo_ref[...]

        # Mask padded action columns out of the softmax normalization.
        col = jax.lax.broadcasted_iota(jnp.int32, logits.shape, 1)
        logits = jnp.where(col < ac_dim, logits, -jnp.inf)

        # Numerically-stable log_softmax over the (lane-dense, 128-wide) last dim.
        m = jnp.max(logits, axis=-1, keepdims=True)
        shifted = logits - m
        lse = jnp.log(jnp.sum(jnp.exp(shifted), axis=-1, keepdims=True))
        out_ref[...] = (shifted - lse).astype(out_ref.dtype)

    return kernel


def pack_params(params, *, lane: int = 128):
    """One-time packing of raw (W, b) layers into padded, stacked bf16/f32 slabs.

    Call this once whenever the parameters change (NOT per forward call).
    params: list of (W, b); hidden layers first, output layer last.
            W: [in, out] (transpose of torch Linear), b: [1, out].
    Returns (wh, bh, wo, bo):
        wh: [n_layers, feat_pad, feat_pad] bf16   bh: [n_layers, 1, feat_pad] f32
        wo: [feat_pad, ac_pad] bf16               bo: [1, ac_pad] f32
    """
    assert len(params) >= 2, "expect at least one hidden layer and one output layer"
    n_layers = len(params) - 1
    ob_dim = params[0][0].shape[0]
    layer_size = params[0][0].shape[1]
    ac_dim = params[-1][0].shape[1]

    feat_pad = _round_up(max(ob_dim, layer_size), lane)
    ac_pad = _round_up(ac_dim, lane)

    wh = jnp.zeros((n_layers, feat_pad, feat_pad), jnp.bfloat16)
    bh = jnp.zeros((n_layers, 1, feat_pad), jnp.float32)
    for i, (w, b) in enumerate(params[:-1]):
        wh = wh.at[i, : w.shape[0], : w.shape[1]].set(w.astype(jnp.bfloat16))
        bh = bh.at[i, :, : b.shape[1]].set(b.astype(jnp.float32))
    w_out, b_out = params[-1]
    wo = (
        jnp.zeros((feat_pad, ac_pad), jnp.bfloat16)
        .at[: w_out.shape[0], : w_out.shape[1]]
        .set(w_out.astype(jnp.bfloat16))
    )
    bo = jnp.zeros((1, ac_pad), jnp.float32).at[:, : b_out.shape[1]].set(b_out.astype(jnp.float32))
    return wh, bh, wo, bo


def mlp_policy_forward(
    obs,
    packed,
    *,
    ac_dim: int,
    block_b: int = 1024,
    min_grid_steps: int = 1,   # set 2 on v7x to shard the batch across both TensorCores
    tanh_in_bf16: bool = True,  # set False on v5e (no bf16 VPU/EUP)
    out_dtype=jnp.float32,
):
    """MLPPolicy forward (discrete): log-probabilities over actions.

    obs:    [B, ob_dim] float32
    packed: output of pack_params (pre-padded bf16/f32 parameter slabs)
    returns [B, ac_dim] log-probabilities (out_dtype).
    """
    wh, bh, wo, bo = packed
    B, ob_dim = obs.shape
    n_layers, feat_pad, _ = wh.shape
    ac_pad = wo.shape[1]

    # --- Grid shaping -------------------------------------------------------
    # Single big tile by default (single-TC v5e/v6e: grid is a sequential loop,
    # extra steps are pure overhead). min_grid_steps=2 gives v7x an even batch
    # split across its two TensorCores via the "parallel" dimension semantics.
    block_b = max(8, min(block_b, _round_up(B, 8)))
    block_b = _round_up(block_b, 8)
    B_pad = _round_up(B, block_b)
    if min_grid_steps > 1:
        while (B_pad // block_b) < min_grid_steps and block_b > 8:
            block_b = max(8, _round_up(block_b // 2, 8))
            B_pad = _round_up(B, block_b)
        steps = _round_up(B_pad // block_b, min_grid_steps)
        B_pad = steps * block_b
    grid = (B_pad // block_b,)

    # Single fused pad (cast + zero-extend); padded feature columns hit zero
    # weight rows, padded batch rows are sliced off below.
    obs_p = jnp.pad(
        obs.astype(jnp.bfloat16), ((0, B_pad - B), (0, feat_pad - ob_dim))
    )

    kernel = _make_mlp_policy_kernel(n_layers, ac_dim, tanh_in_bf16)

    flops = 2 * B_pad * (n_layers * feat_pad * feat_pad + feat_pad * ac_pad)
    transcendentals = B_pad * (n_layers * feat_pad + ac_pad)
    out_bytes = jnp.dtype(out_dtype).itemsize
    bytes_accessed = (
        obs_p.size * 2 + wh.size * 2 + bh.size * 4 + wo.size * 2 + bo.size * 4
        + B_pad * ac_pad * out_bytes
    )

    out_padded = pl.pallas_call(
        kernel,
        out_shape=jax.ShapeDtypeStruct((B_pad, ac_pad), out_dtype),
        grid_spec=pltpu.PrefetchScalarGridSpec(
            num_scalar_prefetch=0,
            grid=grid,
            in_specs=[
                pl.BlockSpec((block_b, feat_pad), lambda i: (i, 0)),
                pl.BlockSpec((n_layers, feat_pad, feat_pad), lambda i: (0, 0, 0)),
                pl.BlockSpec((n_layers, 1, feat_pad), lambda i: (0, 0, 0)),
                pl.BlockSpec((feat_pad, ac_pad), lambda i: (0, 0)),
                pl.BlockSpec((1, ac_pad), lambda i: (0, 0)),
            ],
            out_specs=pl.BlockSpec((block_b, ac_pad), lambda i: (i, 0)),
        ),
        compiler_params=pltpu.CompilerParams(
            dimension_semantics=("parallel",),
        ),
        cost_estimate=pl.CostEstimate(
            flops=flops, transcendentals=transcendentals, bytes_accessed=bytes_accessed
        ),
    )(obs_p, wh, bh, wo, bo)

    # Drop batch / action padding. (For large B, fusing the consumer — sampling /
    # NLL — into the kernel would avoid this writeback entirely.)
    return out_padded[:B, :ac_dim]


def init_params(key, ob_dim, ac_dim, n_layers, layer_size):
    """Deterministic parameter init (PyTorch Linear-style uniform fan-in scaling)."""
    params = []
    dims = [ob_dim] + [layer_size] * n_layers + [ac_dim]
    for i in range(len(dims) - 1):
        fan_in, fan_out = dims[i], dims[i + 1]
        key, kw, kb = jax.random.split(key, 3)
        bound = 1.0 / jnp.sqrt(jnp.float32(fan_in))
        w = jax.random.uniform(kw, (fan_in, fan_out), jnp.float32, -bound, bound)
        b = jax.random.uniform(kb, (1, fan_out), jnp.float32, -bound, bound)
        params.append((w, b))
    return params


def reference_forward(obs, params):
    """Pure-JAX f32 reference mirroring the PyTorch forward."""
    x = obs
    for w, b in params[:-1]:
        x = jnp.tanh(x @ w + b)
    w, b = params[-1]
    logits = x @ w + b
    return jax.nn.log_softmax(logits, axis=-1)


if __name__ == "__main__":
    # Shapes consistent with MLPPolicy: ob_dim=16, ac_dim=4, n_layers=2 hidden
    # layers of layer_size=32, discrete=True. Batch of 512 -> a single 512-row
    # tile / one grid step on the default (single-TC) configuration.
    B, ob_dim, ac_dim, n_layers, layer_size = 512, 16, 4, 2, 32

    key = jax.random.PRNGKey(0)
    key, k_obs = jax.random.split(key)
    obs = jax.random.normal(k_obs, (B, ob_dim), dtype=jnp.float32)

    params = init_params(key, ob_dim, ac_dim, n_layers, layer_size)

    # Pack parameters ONCE (outside the per-call hot path), then jit the forward
    # so pad -> kernel -> slice run as one compiled program.
    packed = pack_params(params)
    fwd = jax.jit(functools.partial(mlp_policy_forward, ac_dim=ac_dim))

    out = fwd(obs, packed)
    out = jax.block_until_ready(out)

    ref = reference_forward(obs, params)
    assert out.shape == (B, ac_dim)
    # bf16 MXU operands / bf16 tanh with f32 accumulation -> looser tolerance.
    max_err = float(jnp.max(jnp.abs(out - ref)))
    assert max_err < 5e-2, f"Pallas output mismatch vs reference (max abs err {max_err})"

    # TODO(synk): Adam optimizer / `update` and torch.distributions sampling
    # (get_action) are training/inference-side machinery outside the forward
    # hot path; not implemented here.
    print("KERNEL_OK")
</pallas_src>

<mosaic_0001>
module attributes {stable_mosaic.version = 11 : i64} {
  func.func @kernel(%arg0: i32, %arg1: memref<512x128xbf16, #tpu.memory_space<vmem>>, %arg2: memref<2x128x128xbf16, #tpu.memory_space<vmem>>, %arg3: memref<2x1x128xf32, #tpu.memory_space<vmem>>, %arg4: memref<128x128xbf16, #tpu.memory_space<vmem>>, %arg5: memref<1x128xf32, #tpu.memory_space<vmem>>, %arg6: memref<512x128xf32, #tpu.memory_space<vmem>>) attributes {dimension_semantics = [#tpu.dimension_semantics<parallel>], iteration_bounds = array<i64: 1>, scalar_prefetch = 0 : i64, scratch_operands = 0 : i64, tpu.core_type = #tpu.core_type<tc>, window_params = [{transform_indices = @transform_0, window_bounds = array<i64: 512, 128>}, {pipeline_mode = #tpu.pipeline_mode<synchronous>, transform_indices = @transform_1, window_bounds = array<i64: 2, 128, 128>}, {pipeline_mode = #tpu.pipeline_mode<synchronous>, transform_indices = @transform_2, window_bounds = array<i64: 2, 1, 128>}, {pipeline_mode = #tpu.pipeline_mode<synchronous>, transform_indices = @transform_3, window_bounds = array<i64: 128, 128>}, {pipeline_mode = #tpu.pipeline_mode<synchronous>, transform_indices = @transform_4, window_bounds = array<i64: 1, 128>}, {transform_indices = @transform_5, window_bounds = array<i64: 512, 128>}]} {
    %c0 = arith.constant 0 : index
    %c0_0 = arith.constant 0 : index
    %0 = vector.load %arg1[%c0, %c0_0] : memref<512x128xbf16, #tpu.memory_space<vmem>>, vector<512x128xbf16>
    %c0_1 = arith.constant 0 : index
    %c0_2 = arith.constant 0 : index
    %c0_3 = arith.constant 0 : index
    %1 = vector.load %arg2[%c0_1, %c0_2, %c0_3] : memref<2x128x128xbf16, #tpu.memory_space<vmem>>, vector<1x128x128xbf16>
    %2 = vector.shape_cast %1 : vector<1x128x128xbf16> to vector<128x128xbf16>
    %cst = arith.constant dense<0.000000e+00> : vector<512x128xf32>
    %3 = tpu.matmul %0, %2, %cst {dimension_numbers = #tpu.dot_dimension_numbers<[1], [0], [0], [1], [0, 0, 1, 1], [], []>} : vector<512x128xbf16>, vector<128x128xbf16>, vector<512x128xf32> -> vector<512x128xf32>
    %c0_4 = arith.constant 0 : index
    %c0_5 = arith.constant 0 : index
    %c0_6 = arith.constant 0 : index
    %4 = vector.load %arg3[%c0_4, %c0_5, %c0_6] : memref<2x1x128xf32, #tpu.memory_space<vmem>>, vector<1x1x128xf32>
    %5 = vector.shape_cast %4 : vector<1x1x128xf32> to vector<1x128xf32>
    %6 = vector.broadcast %5 : vector<1x128xf32> to vector<512x128xf32>
    %7 = arith.addf %3, %6 : vector<512x128xf32>
    %8 = arith.truncf %7 : vector<512x128xf32> to vector<512x128xbf16>
    %9 = math.tanh %8 : vector<512x128xbf16>
    %c1 = arith.constant 1 : index
    %c0_7 = arith.constant 0 : index
    %c0_8 = arith.constant 0 : index
    %10 = vector.load %arg2[%c1, %c0_7, %c0_8] : memref<2x128x128xbf16, #tpu.memory_space<vmem>>, vector<1x128x128xbf16>
    %11 = vector.shape_cast %10 : vector<1x128x128xbf16> to vector<128x128xbf16>
    %cst_9 = arith.constant dense<0.000000e+00> : vector<512x128xf32>
    %12 = tpu.matmul %9, %11, %cst_9 {dimension_numbers = #tpu.dot_dimension_numbers<[1], [0], [0], [1], [0, 0, 1, 1], [], []>} : vector<512x128xbf16>, vector<128x128xbf16>, vector<512x128xf32> -> vector<512x128xf32>
    %c1_10 = arith.constant 1 : index
    %c0_11 = arith.constant 0 : index
    %c0_12 = arith.constant 0 : index
    %13 = vector.load %arg3[%c1_10, %c0_11, %c0_12] : memref<2x1x128xf32, #tpu.memory_space<vmem>>, vector<1x1x128xf32>
    %14 = vector.shape_cast %13 : vector<1x1x128xf32> to vector<1x128xf32>
    %15 = vector.broadcast %14 : vector<1x128xf32> to vector<512x128xf32>
    %16 = arith.addf %12, %15 : vector<512x128xf32>
    %17 = arith.truncf %16 : vector<512x128xf32> to vector<512x128xbf16>
    %18 = math.tanh %17 : vector<512x128xbf16>
    %c0_13 = arith.constant 0 : index
    %c0_14 = arith.constant 0 : index
    %19 = vector.load %arg4[%c0_13, %c0_14] : memref<128x128xbf16, #tpu.memory_space<vmem>>, vector<128x128xbf16>
    %cst_15 = arith.constant dense<0.000000e+00> : vector<512x128xf32>
    %20 = tpu.matmul %18, %19, %cst_15 {dimension_numbers = #tpu.dot_dimension_numbers<[1], [0], [0], [1], [0, 0, 1, 1], [], []>} : vector<512x128xbf16>, vector<128x128xbf16>, vector<512x128xf32> -> vector<512x128xf32>
    %c0_16 = arith.constant 0 : index
    %c0_17 = arith.constant 0 : index
    %21 = vector.load %arg5[%c0_16, %c0_17] : memref<1x128xf32, #tpu.memory_space<vmem>>, vector<1x128xf32>
    %22 = vector.broadcast %21 : vector<1x128xf32> to vector<512x128xf32>
    %23 = arith.addf %20, %22 : vector<512x128xf32>
    %24 = tpu.iota {dimensions = array<i32: 1>} : vector<512x128xi32>
    %c4_i32 = arith.constant 4 : i32
    %25 = vector.broadcast %c4_i32 : i32 to vector<512x128xi32>
    %26 = arith.cmpi slt, %24, %25 : vector<512x128xi32>
    %cst_18 = arith.constant 0xFF800000 : f32
    %27 = vector.broadcast %cst_18 : f32 to vector<512x128xf32>
    %28 = arith.select %26, %23, %27 : vector<512x128xi1>, vector<512x128xf32>
    %cst_19 = arith.constant dense<0xFF800000> : vector<512xf32>
    %29 = vector.multi_reduction <maximumf>, %28, %cst_19 [1] : vector<512x128xf32> to vector<512xf32>
    %30 = vector.shape_cast %29 : vector<512xf32> to vector<512x1xf32>
    %31 = vector.broadcast %30 : vector<512x1xf32> to vector<512x128xf32>
    %32 = arith.subf %28, %31 : vector<512x128xf32>
    %33 = math.exp %32 : vector<512x128xf32>
    %cst_20 = arith.constant dense<0.000000e+00> : vector<512xf32>
    %34 = vector.multi_reduction <add>, %33, %cst_20 [1] : vector<512x128xf32> to vector<512xf32>
    %35 = vector.shape_cast %34 : vector<512xf32> to vector<512x1xf32>
    %36 = math.log %35 : vector<512x1xf32>
    %37 = vector.broadcast %36 : vector<512x1xf32> to vector<512x128xf32>
    %38 = arith.subf %32, %37 : vector<512x128xf32>
    %c0_21 = arith.constant 0 : index
    %c0_22 = arith.constant 0 : index
    %39 = vector.load %arg6[%c0_21, %c0_22] : memref<512x128xf32, #tpu.memory_space<vmem>>, vector<512x128xf32>
    tpu.vector_store %arg6[%c0_21, %c0_22], %38 {strides = array<i32>} : memref<512x128xf32, #tpu.memory_space<vmem>>, vector<512x128xf32>,
    return
  }
  func.func @transform_0(%arg0: i32) -> (i32, i32) {
    %c0_i32 = arith.constant 0 : i32
    %c0_i32_0 = arith.constant 0 : i32
    return %arg0, %c0_i32 : i32, i32
  }
  func.func @transform_1(%arg0: i32) -> (i32, i32, i32) {
    %c0_i32 = arith.constant 0 : i32
    %c0_i32_0 = arith.constant 0 : i32
    %c0_i32_1 = arith.constant 0 : i32
    %c0_i32_2 = arith.constant 0 : i32
    return %c0_i32, %c0_i32_0, %c0_i32_1 : i32, i32, i32
  }
  func.func @transform_2(%arg0: i32) -> (i32, i32, i32) {
    %c0_i32 = arith.constant 0 : i32
    %c0_i32_0 = arith.constant 0 : i32
    %c0_i32_1 = arith.constant 0 : i32
    %c0_i32_2 = arith.constant 0 : i32
    return %c0_i32, %c0_i32_0, %c0_i32_1 : i32, i32, i32
  }
  func.func @transform_3(%arg0: i32) -> (i32, i32) {
    %c0_i32 = arith.constant 0 : i32
    %c0_i32_0 = arith.constant 0 : i32
    %c0_i32_1 = arith.constant 0 : i32
    return %c0_i32, %c0_i32_0 : i32, i32
  }
  func.func @transform_4(%arg0: i32) -> (i32, i32) {
    %c0_i32 = arith.constant 0 : i32
    %c0_i32_0 = arith.constant 0 : i32
    %c0_i32_1 = arith.constant 0 : i32
    return %c0_i32, %c0_i32_0 : i32, i32
  }
  func.func @transform_5(%arg0: i32) -> (i32, i32) {
    %c0_i32 = arith.constant 0 : i32
    %c0_i32_0 = arith.constant 0 : i32
    return %arg0, %c0_i32 : i32, i32
  }
}

</mosaic_0001>

<bundles_post_ra>
// kernel: mlp_policy_forward.1
= control target key start
LH: loop header
LB: loop body
LE: loop exit
PB: predicated region body
PF: predicated region fallthrough
CT: control target
= control target key end

     0   :  { %s4260_s1 = inlined_call_operand.vmem [shape: bf16[2,128,128], index: 1, kind: input, shape index: {}]   ;;  %s4261_s2 = inlined_call_operand.vmem [shape: f32[2,1,128], index: 2, kind: input, shape index: {}]   ;;  %s4262_s0 = inlined_call_operand.vmem [shape: bf16[512,128], index: 0, kind: input, shape index: {}]   ;;  %s4263_s3 = inlined_call_operand.vmem [shape: bf16[128,128], index: 3, kind: input, shape index: {}]   ;;  %s4264_s4 = inlined_call_operand.vmem [shape: f32[1,128], index: 4, kind: input, shape index: {}]   ;;  %s4265_s5 = inlined_call_operand.vmem [shape: f32[512,128], index: 5, kind: output, shape index: {}]  }
   0x1   :  { %v2428_v0 = vld [vmem:[%s4260_s1 + $0x38] sm:$0xff]  ;;  %v2427_v1 = vld [vmem:[%s4260_s1 + $0x30] sm:$0xff]  ;;  %v2426_v2 = vld [vmem:[%s4260_s1 + $0x28] sm:$0xff] }
   0x2   :  { %344 = vmatpush.bf16.msra.mxu0 %v2428_v0  ;;  %2445 = vmatpush.bf16.msra.mxu3 %v2428_v0  ;;  %v2425_v3 = vld [vmem:[%s4260_s1 + $0x20] sm:$0xff]  ;;  %v2424_v4 = vld [vmem:[%s4260_s1 + $0x18] sm:$0xff]  ;;  %v2423_v6 = vld [vmem:[%s4260_s1 + $0x10] sm:$0xff] }
   0x3   :  { %v2436_v5 = vld [vmem:[%s4260_s1 + $0x78] sm:$0xff]  ;;  %v2422_v7 = vld [vmem:[%s4260_s1 + $0x8] sm:$0xff]  ;;  %v2421_v8 = vld [vmem:[%s4260_s1] sm:$0xff] }
   0x4   :  { %775 = vmatpush.bf16.msra.mxu1 %v2436_v5  ;;  %v2389_v9 = vld [vmem:[%s4262_s0] sm:$0xff]  ;;  %v2435_v11 = vld [vmem:[%s4260_s1 + $0x70] sm:$0xff]  ;;  %v2390_v12 = vld [vmem:[%s4262_s0 + $0x8] sm:$0xff] }
   0x5   :  { %v2413_v10 = vld [vmem:[%s4262_s0 + $0xc0] sm:$0xff]  ;;  %v2414_v13 = vld [vmem:[%s4262_s0 + $0xc8] sm:$0xff]  ;;  %v2391_v15 = vld [vmem:[%s4262_s0 + $0x10] sm:$0xff] }
   0x6   :  { %345 = vmatpush.bf16.msra.mxu0 %v2427_v1  ;;  %2446 = vmatpush.bf16.msra.mxu3 %v2427_v1  ;;  %v2434_v14 = vld [vmem:[%s4260_s1 + $0x68] sm:$0xff]  ;;  %v2415_v16 = vld [vmem:[%s4262_s0 + $0xd0] sm:$0xff]  ;;  %v2433_v17 = vld [vmem:[%s4260_s1 + $0x60] sm:$0xff] }
   0x7   :  { %v2392_v18 = vld [vmem:[%s4262_s0 + $0x18] sm:$0xff]  ;;  %v2393_v21 = vld [vmem:[%s4262_s0 + $0x20] sm:$0xff]  ;;  %v2431_v23 = vld [vmem:[%s4260_s1 + $0x50] sm:$0xff] }
   0x8   :  { %776 = vmatpush.bf16.msra.mxu1 %v2435_v11  ;;  %v2416_v19 = vld [vmem:[%s4262_s0 + $0xd8] sm:$0xff]  ;;  %v2417_v22 = vld [vmem:[%s4262_s0 + $0xe0] sm:$0xff]  ;;  %v2394_v24 = vld [vmem:[%s4262_s0 + $0x28] sm:$0xff] }
   0x9   :  { %v2432_v20 = vld [vmem:[%s4260_s1 + $0x58] sm:$0xff]  ;;  %v2418_v25 = vld [vmem:[%s4262_s0 + $0xe8] sm:$0xff]  ;;  %v2395_v26 = vld [vmem:[%s4262_s0 + $0x30] sm:$0xff] }
   0xa   :  { %346 = vmatpush.bf16.msra.mxu0 %v2426_v2  ;;  %2447 = vmatpush.bf16.msra.mxu3 %v2426_v2  ;;  %v2419_v27 = vld [vmem:[%s4262_s0 + $0xf0] sm:$0xff]  ;;  %v2430_v28 = vld [vmem:[%s4260_s1 + $0x48] sm:$0xff]  ;;  %v2396_v29 = vld [vmem:[%s4262_s0 + $0x38] sm:$0xff] }
   0xb   :  { %v2420_v30 = vld [vmem:[%s4262_s0 + $0xf8] sm:$0xff]  ;;  %v2429_v31 = vld [vmem:[%s4260_s1 + $0x40] sm:$0xff]  ;;  %v2398_v45 = vld [vmem:[%s4262_s0 + $0x48] sm:$0xff] }
   0xc   :  { %777 = vmatpush.bf16.msra.mxu1 %v2434_v14  ;;  %v2397_v32 = vld [vmem:[%s4262_s0 + $0x40] sm:$0xff]  ;;  %v2399_v2 = vld [vmem:[%s4262_s0 + $0x50] sm:$0xff] }
   0xd   :  { %v3119_v34 = vld [vmem:[%s4261_s2] ss:$0 sm:$0xff] }
   0xe   :  { %347 = vmatpush.bf16.msra.mxu0 %v2425_v3  ;;  %2448 = vmatpush.bf16.msra.mxu3 %v2425_v3 }
  0x10   :  { %778 = vmatpush.bf16.msra.mxu1 %v2433_v17 }
  0x12   :  { %348 = vmatpush.bf16.msra.mxu0 %v2424_v4  ;;  %2449 = vmatpush.bf16.msra.mxu3 %v2424_v4  ;;  %v2444_v4 = vld [vmem:[%s4263_s3 + $0x38] sm:$0xff] }
  0x13   :  { %1204 = vmatpush.bf16.msra.mxu2 %v2444_v4 }
  0x14   :  { %779 = vmatpush.bf16.msra.mxu1 %v2432_v20 }
  0x16   :  { %349 = vmatpush.bf16.msra.mxu0 %v2423_v6  ;;  %2450 = vmatpush.bf16.msra.mxu3 %v2423_v6 }
  0x18   :  { %780 = vmatpush.bf16.msra.mxu1 %v2431_v23 }
  0x1a   :  { %350 = vmatpush.bf16.msra.mxu0 %v2422_v7  ;;  %2451 = vmatpush.bf16.msra.mxu3 %v2422_v7 }
  0x1c   :  { %781 = vmatpush.bf16.msra.mxu1 %v2430_v28 }
  0x1e   :  { %351 = vmatpush.bf16.msra.mxu0 %v2421_v8  ;;  %2452 = vmatpush.bf16.msra.mxu3 %v2421_v8 }
  0x20   :  { %782 = vmatpush.bf16.msra.mxu1 %v2429_v31 }
  0x21   :  { %352 = vmatmul.bf16.vlgmr.msra.gmra.mxu0 %v2389_v9  ;;  %472 = vmatmul.bf16.vlgmr.msra.gmra.mxu3 %v2413_v10 }
  0x22   :  { %2453 = vmatpush.bf16.msrb.mxu3 %v2436_v5 }
  0x26   :  { %2454 = vmatpush.bf16.msrb.mxu3 %v2435_v11 }
  0x2a   :  { %2455 = vmatpush.bf16.msrb.mxu3 %v2434_v14 }
  0x2e   :  { %2456 = vmatpush.bf16.msrb.mxu3 %v2433_v17 }
  0x31   :  { %357 = vmatmul.bf16.gmra.mxu0 %v2390_v12  ;;  %477 = vmatmul.bf16.gmra.mxu3 %v2414_v13 }
  0x32   :  { %2457 = vmatpush.bf16.msrb.mxu3 %v2432_v20 }
  0x36   :  { %2458 = vmatpush.bf16.msrb.mxu3 %v2431_v23 }
  0x3a   :  { %2459 = vmatpush.bf16.msrb.mxu3 %v2430_v28 }
  0x3e   :  { %2460 = vmatpush.bf16.msrb.mxu3 %v2429_v31 }
  0x41   :  { %362 = vmatmul.bf16.gmra.mxu0 %v2391_v15  ;;  %482 = vmatmul.bf16.gmra.mxu3 %v2415_v16 }
  0x42   :  { %2461 = vmatpush.bf16.msra.mxu3 %v2444_v4 }
  0x51   :  { %367 = vmatmul.bf16.gmra.mxu0 %v2392_v18  ;;  %487 = vmatmul.bf16.gmra.mxu3 %v2416_v19 }
  0x61   :  { %372 = vmatmul.bf16.gmra.mxu0 %v2393_v21  ;;  %492 = vmatmul.bf16.gmra.mxu3 %v2417_v22 }
  0x71   :  { %377 = vmatmul.bf16.gmra.mxu0 %v2394_v24  ;;  %497 = vmatmul.bf16.gmra.mxu3 %v2418_v25  ;;  %v2400_v24 = vld [vmem:[%s4262_s0 + $0x58] sm:$0xff] }
  0x81   :  { %382 = vmatmul.bf16.gmra.mxu0 %v2395_v26  ;;  %502 = vmatmul.bf16.gmra.mxu3 %v2419_v27  ;;  %v2443_v26 = vld [vmem:[%s4263_s3 + $0x30] sm:$0xff] }
  0x82   :  { %2462 = vmatpush.bf16.msra.mxu3 %v2443_v26  ;;  %1205 = vmatpush.bf16.msra.mxu2 %v2443_v26 }
  0x91   :  { %387 = vmatmul.bf16.gmra.mxu0 %v2396_v29  ;;  %507 = vmatmul.bf16.gmra.mxu3 %v2420_v30 }
  0x9e   :  { %v353_v33 = vpop.f32.mrf.mxu0 }
  0x9f   :  { %v354_v37 = vadd.f32 %v3119_v34, %v353_v33 }
  0xa1   :  { %392 = vmatmul.bf16.gmra.mxu0 %v2397_v32 }
  0xa4   :  { %v473_v35 = vpop.f32.mrf.mxu3 }
  0xa5   :  { %v474_v43 = vadd.f32 %v3119_v34, %v473_v35 }
  0xa6   :  { %v355_v36 = vpop.f32.mrf.mxu0 }
  0xa7   :  { %v356_v38 = vadd.f32 %v3119_v34, %v355_v36 }
  0xa9   :  { %v513_v39 = vpack.c.bf16 %v356_v38, %v354_v37 }
  0xab   :  { %v545_v40 = vunpack.c.l.bf16 %v513_v39  ;;  %v546_v41 = vunpack.c.h.bf16 %v513_v39 }
  0xac   :  { %v475_v42 = vpop.f32.mrf.mxu3 }
  0xad   :  { %2472 = vtanh.f32 %v545_v40  ;;  %v476_v44 = vadd.f32 %v3119_v34, %v475_v42 }
  0xae   :  { %2474 = vtanh.f32 %v546_v41  ;;  %v358_v46 = vpop.f32.mrf.mxu0 }
  0xaf   :  { %v537_v47 = vpack.c.bf16 %v476_v44, %v474_v43  ;;  %v359_v55 = vadd.f32 %v3119_v34, %v358_v46 }
  0xb1   :  { %v593_v48 = vunpack.c.l.bf16 %v537_v47  ;;  %v594_v49 = vunpack.c.h.bf16 %v537_v47  ;;  %397 = vmatmul.bf16.gmra.mxu0 %v2398_v45  ;;  %v2401_v47 = vld [vmem:[%s4262_s0 + $0x60] sm:$0xff] }
  0xb3   :  { %v2473_v50 = vpop.eup %2472  ;;  %2476 = vtanh.f32 %v593_v48 }
  0xb4   :  { %v2475_v51 = vpop.eup %2474  ;;  %2478 = vtanh.f32 %v594_v49  ;;  %v478_v52 = vpop.f32.mrf.mxu3  ;;  %v2442_v49 = vld [vmem:[%s4263_s3 + $0x28] sm:$0xff] }
  0xb5   :  { %v673_v53 = vpack.c.bf16 %v2475_v51, %v2473_v50  ;;  %v479_v0 = vadd.f32 %v3119_v34, %v478_v52  ;;  %2463 = vmatpush.bf16.msra.mxu3 %v2442_v49  ;;  %1206 = vmatpush.bf16.msra.mxu2 %v2442_v49 }
  0xb6   :  { %v360_v54 = vpop.f32.mrf.mxu0 }
  0xb7   :  { %v361_v56 = vadd.f32 %v3119_v34, %v360_v54  ;;  %783 = vmatmul.bf16.vlgmr.msra.gmra.mxu1 %v673_v53 }
  0xb9   :  { %v2477_v57 = vpop.eup %2476  ;;  %v514_v58 = vpack.c.bf16 %v361_v56, %v359_v55 }
  0xba   :  { %v2479_v59 = vpop.eup %2478 }
  0xbb   :  { %v547_v60 = vunpack.c.l.bf16 %v514_v58  ;;  %v548_v61 = vunpack.c.h.bf16 %v514_v58  ;;  %v697_v62 = vpack.c.bf16 %v2479_v59, %v2477_v57 }
  0xbc   :  { %v480_v63 = vpop.f32.mrf.mxu3 }
  0xbd   :  { %2480 = vtanh.f32 %v547_v60  ;;  %v481_v1 = vadd.f32 %v3119_v34, %v480_v63  ;;  %903 = vmatmul.bf16.vlgmr.msrb.gmra.mxu3 %v697_v62 }
  0xbe   :  { %2482 = vtanh.f32 %v548_v61  ;;  %v363_v3 = vpop.f32.mrf.mxu0 }
  0xbf   :  { %v538_v5 = vpack.c.bf16 %v481_v1, %v479_v0  ;;  %v364_v13 = vadd.f32 %v3119_v34, %v363_v3 }
  0xc1   :  { %v595_v6 = vunpack.c.l.bf16 %v538_v5  ;;  %v596_v7 = vunpack.c.h.bf16 %v538_v5  ;;  %402 = vmatmul.bf16.gmra.mxu0 %v2399_v2  ;;  %v2402_v5 = vld [vmem:[%s4262_s0 + $0x68] sm:$0xff] }
  0xc3   :  { %v2481_v8 = vpop.eup %2480  ;;  %2484 = vtanh.f32 %v595_v6 }
  0xc4   :  { %v2483_v9 = vpop.eup %2482  ;;  %2486 = vtanh.f32 %v596_v7  ;;  %v483_v10 = vpop.f32.mrf.mxu3  ;;  %v2441_v7 = vld [vmem:[%s4263_s3 + $0x20] sm:$0xff] }
  0xc5   :  { %v674_v11 = vpack.c.bf16 %v2483_v9, %v2481_v8  ;;  %v484_v22 = vadd.f32 %v3119_v34, %v483_v10  ;;  %2464 = vmatpush.bf16.msra.mxu3 %v2441_v7  ;;  %1207 = vmatpush.bf16.msra.mxu2 %v2441_v7 }
  0xc6   :  { %v365_v12 = vpop.f32.mrf.mxu0 }
  0xc7   :  { %v366_v14 = vadd.f32 %v3119_v34, %v365_v12  ;;  %788 = vmatmul.bf16.gmra.mxu1 %v674_v11 }
  0xc9   :  { %v2485_v15 = vpop.eup %2484  ;;  %v515_v16 = vpack.c.bf16 %v366_v14, %v364_v13 }
  0xca   :  { %v2487_v17 = vpop.eup %2486 }
  0xcb   :  { %v549_v18 = vunpack.c.l.bf16 %v515_v16  ;;  %v550_v19 = vunpack.c.h.bf16 %v515_v16  ;;  %v698_v20 = vpack.c.bf16 %v2487_v17, %v2485_v15 }
  0xcc   :  { %v485_v21 = vpop.f32.mrf.mxu3 }
  0xcd   :  { %2488 = vtanh.f32 %v549_v18  ;;  %v486_v23 = vadd.f32 %v3119_v34, %v485_v21  ;;  %908 = vmatmul.bf16.gmra.mxu3 %v698_v20 }
  0xce   :  { %2490 = vtanh.f32 %v550_v19  ;;  %v368_v25 = vpop.f32.mrf.mxu0 }
  0xcf   :  { %v539_v27 = vpack.c.bf16 %v486_v23, %v484_v22  ;;  %v369_v36 = vadd.f32 %v3119_v34, %v368_v25 }
  0xd1   :  { %v597_v28 = vunpack.c.l.bf16 %v539_v27  ;;  %v598_v29 = vunpack.c.h.bf16 %v539_v27  ;;  %407 = vmatmul.bf16.gmra.mxu0 %v2400_v24  ;;  %v2403_v27 = vld [vmem:[%s4262_s0 + $0x70] sm:$0xff] }
  0xd3   :  { %v2489_v30 = vpop.eup %2488  ;;  %2492 = vtanh.f32 %v597_v28 }
  0xd4   :  { %v2491_v31 = vpop.eup %2490  ;;  %2494 = vtanh.f32 %v598_v29  ;;  %v488_v32 = vpop.f32.mrf.mxu3  ;;  %v2440_v29 = vld [vmem:[%s4263_s3 + $0x18] sm:$0xff] }
  0xd5   :  { %v675_v33 = vpack.c.bf16 %v2491_v31, %v2489_v30  ;;  %v489_v45 = vadd.f32 %v3119_v34, %v488_v32  ;;  %2465 = vmatpush.bf16.msra.mxu3 %v2440_v29  ;;  %1208 = vmatpush.bf16.msra.mxu2 %v2440_v29 }
  0xd6   :  { %v370_v35 = vpop.f32.mrf.mxu0 }
  0xd7   :  { %v371_v37 = vadd.f32 %v3119_v34, %v370_v35  ;;  %793 = vmatmul.bf16.gmra.mxu1 %v675_v33 }
  0xd9   :  { %v2493_v38 = vpop.eup %2492  ;;  %v516_v39 = vpack.c.bf16 %v371_v37, %v369_v36 }
  0xda   :  { %v2495_v40 = vpop.eup %2494 }
  0xdb   :  { %v551_v41 = vunpack.c.l.bf16 %v516_v39  ;;  %v552_v42 = vunpack.c.h.bf16 %v516_v39  ;;  %v699_v43 = vpack.c.bf16 %v2495_v40, %v2493_v38 }
  0xdc   :  { %v490_v44 = vpop.f32.mrf.mxu3 }
  0xdd   :  { %2496 = vtanh.f32 %v551_v41  ;;  %v491_v46 = vadd.f32 %v3119_v34, %v490_v44  ;;  %913 = vmatmul.bf16.gmra.mxu3 %v699_v43 }
  0xde   :  { %2498 = vtanh.f32 %v552_v42  ;;  %v373_v48 = vpop.f32.mrf.mxu0 }
  0xdf   :  { %v540_v50 = vpack.c.bf16 %v491_v46, %v489_v45  ;;  %v374_v58 = vadd.f32 %v3119_v34, %v373_v48 }
  0xe1   :  { %v599_v51 = vunpack.c.l.bf16 %v540_v50  ;;  %v600_v52 = vunpack.c.h.bf16 %v540_v50  ;;  %412 = vmatmul.bf16.gmra.mxu0 %v2401_v47  ;;  %v2404_v50 = vld [vmem:[%s4262_s0 + $0x78] sm:$0xff] }
  0xe3   :  { %v2497_v53 = vpop.eup %2496  ;;  %2500 = vtanh.f32 %v599_v51 }
  0xe4   :  { %v2499_v54 = vpop.eup %2498  ;;  %2502 = vtanh.f32 %v600_v52  ;;  %v493_v55 = vpop.f32.mrf.mxu3  ;;  %v2439_v52 = vld [vmem:[%s4263_s3 + $0x10] sm:$0xff] }
  0xe5   :  { %v676_v56 = vpack.c.bf16 %v2499_v54, %v2497_v53  ;;  %v494_v3 = vadd.f32 %v3119_v34, %v493_v55  ;;  %2466 = vmatpush.bf16.msra.mxu3 %v2439_v52  ;;  %1209 = vmatpush.bf16.msra.mxu2 %v2439_v52 }
  0xe6   :  { %v375_v57 = vpop.f32.mrf.mxu0 }
  0xe7   :  { %v376_v59 = vadd.f32 %v3119_v34, %v375_v57  ;;  %798 = vmatmul.bf16.gmra.mxu1 %v676_v56 }
  0xe9   :  { %v2501_v60 = vpop.eup %2500  ;;  %v517_v61 = vpack.c.bf16 %v376_v59, %v374_v58 }
  0xea   :  { %v2503_v62 = vpop.eup %2502 }
  0xeb   :  { %v553_v63 = vunpack.c.l.bf16 %v517_v61  ;;  %v554_v0 = vunpack.c.h.bf16 %v517_v61  ;;  %v700_v1 = vpack.c.bf16 %v2503_v62, %v2501_v60 }
  0xec   :  { %v495_v2 = vpop.f32.mrf.mxu3 }
  0xed   :  { %2504 = vtanh.f32 %v553_v63  ;;  %v496_v4 = vadd.f32 %v3119_v34, %v495_v2  ;;  %918 = vmatmul.bf16.gmra.mxu3 %v700_v1 }
  0xee   :  { %2506 = vtanh.f32 %v554_v0  ;;  %v378_v6 = vpop.f32.mrf.mxu0 }
  0xef   :  { %v541_v8 = vpack.c.bf16 %v496_v4, %v494_v3  ;;  %v379_v16 = vadd.f32 %v3119_v34, %v378_v6 }
  0xf1   :  { %v601_v9 = vunpack.c.l.bf16 %v541_v8  ;;  %v602_v10 = vunpack.c.h.bf16 %v541_v8  ;;  %417 = vmatmul.bf16.gmra.mxu0 %v2402_v5  ;;  %v2405_v8 = vld [vmem:[%s4262_s0 + $0x80] sm:$0xff] }
  0xf3   :  { %v2505_v11 = vpop.eup %2504  ;;  %2508 = vtanh.f32 %v601_v9 }
  0xf4   :  { %v2507_v12 = vpop.eup %2506  ;;  %2510 = vtanh.f32 %v602_v10  ;;  %v498_v13 = vpop.f32.mrf.mxu3 }
  0xf5   :  { %v677_v14 = vpack.c.bf16 %v2507_v12, %v2505_v11  ;;  %v499_v25 = vadd.f32 %v3119_v34, %v498_v13 }
  0xf6   :  { %v380_v15 = vpop.f32.mrf.mxu0 }
  0xf7   :  { %v381_v17 = vadd.f32 %v3119_v34, %v380_v15  ;;  %803 = vmatmul.bf16.gmra.mxu1 %v677_v14  ;;  %v2438_v15 = vld [vmem:[%s4263_s3 + $0x8] sm:$0xff] }
  0xf8   :  { %2467 = vmatpush.bf16.msra.mxu3 %v2438_v15  ;;  %1210 = vmatpush.bf16.msra.mxu2 %v2438_v15 }
  0xf9   :  { %v2509_v18 = vpop.eup %2508  ;;  %v518_v19 = vpack.c.bf16 %v381_v17, %v379_v16 }
  0xfa   :  { %v2511_v20 = vpop.eup %2510 }
  0xfb   :  { %v555_v21 = vunpack.c.l.bf16 %v518_v19  ;;  %v556_v22 = vunpack.c.h.bf16 %v518_v19  ;;  %v701_v23 = vpack.c.bf16 %v2511_v20, %v2509_v18  ;;  %v2437_v20 = vld [vmem:[%s4263_s3] sm:$0xff] }
  0xfc   :  { %v500_v24 = vpop.f32.mrf.mxu3  ;;  %1211 = vmatpush.bf16.msra.mxu2 %v2437_v20  ;;  %2468 = vmatpush.bf16.msra.mxu3 %v2437_v20 }
  0xfd   :  { %2512 = vtanh.f32 %v555_v21  ;;  %v501_v26 = vadd.f32 %v3119_v34, %v500_v24  ;;  %923 = vmatmul.bf16.gmra.mxu3 %v701_v23 }
  0xfe   :  { %2514 = vtanh.f32 %v556_v22  ;;  %v383_v28 = vpop.f32.mrf.mxu0 }
  0xff   :  { %v542_v30 = vpack.c.bf16 %v501_v26, %v499_v25  ;;  %v384_v39 = vadd.f32 %v3119_v34, %v383_v28 }
 0x101   :  { %v603_v31 = vunpack.c.l.bf16 %v542_v30  ;;  %v604_v32 = vunpack.c.h.bf16 %v542_v30  ;;  %422 = vmatmul.bf16.gmra.mxu0 %v2403_v27  ;;  %v2406_v27 = vld [vmem:[%s4262_s0 + $0x88] sm:$0xff] }
 0x103   :  { %v2513_v33 = vpop.eup %2512  ;;  %2516 = vtanh.f32 %v603_v31 }
 0x104   :  { %v2515_v35 = vpop.eup %2514  ;;  %2518 = vtanh.f32 %v604_v32  ;;  %v503_v36 = vpop.f32.mrf.mxu3 }
 0x105   :  { %v678_v37 = vpack.c.bf16 %v2515_v35, %v2513_v33  ;;  %v504_v48 = vadd.f32 %v3119_v34, %v503_v36 }
 0x106   :  { %v385_v38 = vpop.f32.mrf.mxu0 }
 0x107   :  { %v386_v40 = vadd.f32 %v3119_v34, %v385_v38  ;;  %808 = vmatmul.bf16.gmra.mxu1 %v678_v37  ;;  %v3211_v37 = vld [vmem:[%s4261_s2 + $0x1] ss:$0 sm:$0xff] }
 0x109   :  { %v2517_v41 = vpop.eup %2516  ;;  %v519_v42 = vpack.c.bf16 %v386_v40, %v384_v39 }
 0x10a   :  { %v2519_v43 = vpop.eup %2518 }
 0x10b   :  { %v557_v44 = vunpack.c.l.bf16 %v519_v42  ;;  %v558_v45 = vunpack.c.h.bf16 %v519_v42  ;;  %v702_v46 = vpack.c.bf16 %v2519_v43, %v2517_v41 }
 0x10c   :  { %v505_v47 = vpop.f32.mrf.mxu3 }
 0x10d   :  { %2520 = vtanh.f32 %v557_v44  ;;  %v506_v49 = vadd.f32 %v3119_v34, %v505_v47  ;;  %928 = vmatmul.bf16.gmra.mxu3 %v702_v46  ;;  %v2407_v44 = vld [vmem:[%s4262_s0 + $0x90] sm:$0xff] }
 0x10e   :  { %2522 = vtanh.f32 %v558_v45  ;;  %v388_v51 = vpop.f32.mrf.mxu0 }
 0x10f   :  { %v543_v53 = vpack.c.bf16 %v506_v49, %v504_v48  ;;  %v389_v61 = vadd.f32 %v3119_v34, %v388_v51 }
 0x111   :  { %v605_v54 = vunpack.c.l.bf16 %v543_v53  ;;  %v606_v55 = vunpack.c.h.bf16 %v543_v53  ;;  %427 = vmatmul.bf16.gmra.mxu0 %v2404_v50 }
 0x113   :  { %v2521_v56 = vpop.eup %2520  ;;  %2524 = vtanh.f32 %v605_v54 }
 0x114   :  { %v2523_v57 = vpop.eup %2522  ;;  %2526 = vtanh.f32 %v606_v55  ;;  %v508_v58 = vpop.f32.mrf.mxu3 }
 0x115   :  { %v679_v59 = vpack.c.bf16 %v2523_v57, %v2521_v56  ;;  %v509_v2 = vadd.f32 %v3119_v34, %v508_v58 }
 0x116   :  { %v390_v60 = vpop.f32.mrf.mxu0 }
 0x117   :  { %v391_v62 = vadd.f32 %v3119_v34, %v390_v60  ;;  %813 = vmatmul.bf16.gmra.mxu1 %v679_v59 }
 0x119   :  { %v2525_v63 = vpop.eup %2524  ;;  %v520_v0 = vpack.c.bf16 %v391_v62, %v389_v61 }
 0x11a   :  { %v2527_v1 = vpop.eup %2526 }
 0x11b   :  { %v559_v3 = vunpack.c.l.bf16 %v520_v0  ;;  %v560_v4 = vunpack.c.h.bf16 %v520_v0  ;;  %v703_v5 = vpack.c.bf16 %v2527_v1, %v2525_v63 }
 0x11c   :  { %v510_v6 = vpop.f32.mrf.mxu3 }
 0x11d   :  { %2528 = vtanh.f32 %v559_v3  ;;  %v511_v7 = vadd.f32 %v3119_v34, %v510_v6  ;;  %933 = vmatmul.bf16.gmra.mxu3 %v703_v5 }
 0x11e   :  { %2530 = vtanh.f32 %v560_v4  ;;  %v393_v9 = vpop.f32.mrf.mxu0 }
 0x11f   :  { %v544_v10 = vpack.c.bf16 %v511_v7, %v509_v2  ;;  %v394_v16 = vadd.f32 %v3119_v34, %v393_v9 }
 0x121   :  { %v607_v11 = vunpack.c.l.bf16 %v544_v10  ;;  %v608_v12 = vunpack.c.h.bf16 %v544_v10  ;;  %432 = vmatmul.bf16.gmra.mxu0 %v2405_v8  ;;  %v2408_v8 = vld [vmem:[%s4262_s0 + $0x98] sm:$0xff] }
 0x123   :  { %v2529_v13 = vpop.eup %2528  ;;  %2532 = vtanh.f32 %v607_v11 }
 0x124   :  { %v2531_v14 = vpop.eup %2530  ;;  %2534 = vtanh.f32 %v608_v12 }
 0x125   :  { %v680_v17 = vpack.c.bf16 %v2531_v14, %v2529_v13 }
 0x126   :  { %v395_v18 = vpop.f32.mrf.mxu0 }
 0x127   :  { %v396_v19 = vadd.f32 %v3119_v34, %v395_v18  ;;  %818 = vmatmul.bf16.gmra.mxu1 %v680_v17 }
 0x129   :  { %v2533_v21 = vpop.eup %2532  ;;  %v521_v22 = vpack.c.bf16 %v396_v19, %v394_v16 }
 0x12a   :  { %v2535_v23 = vpop.eup %2534 }
 0x12b   :  { %v561_v24 = vunpack.c.l.bf16 %v521_v22  ;;  %v562_v25 = vunpack.c.h.bf16 %v521_v22  ;;  %v704_v26 = vpack.c.bf16 %v2535_v23, %v2533_v21 }
 0x12d   :  { %2536 = vtanh.f32 %v561_v24  ;;  %938 = vmatmul.bf16.gmra.mxu3 %v704_v26 }
 0x12e   :  { %2538 = vtanh.f32 %v562_v25  ;;  %v398_v28 = vpop.f32.mrf.mxu0 }
 0x12f   :  { %v399_v32 = vadd.f32 %v3119_v34, %v398_v28 }
 0x131   :  { %437 = vmatmul.bf16.gmra.mxu0 %v2406_v27 }
 0x133   :  { %v2537_v29 = vpop.eup %2536 }
 0x134   :  { %v2539_v30 = vpop.eup %2538  ;;  %v784_v31 = vpop.f32.mrf.mxu1 }
 0x135   :  { %v681_v33 = vpack.c.bf16 %v2539_v30, %v2537_v29  ;;  %v785_v42 = vadd.f32 %v3211_v37, %v784_v31 }
 0x136   :  { %v400_v35 = vpop.f32.mrf.mxu0 }
 0x137   :  { %v401_v36 = vadd.f32 %v3119_v34, %v400_v35  ;;  %823 = vmatmul.bf16.gmra.mxu1 %v681_v33 }
 0x139   :  { %v522_v38 = vpack.c.bf16 %v401_v36, %v399_v32 }
 0x13b   :  { %v563_v39 = vunpack.c.l.bf16 %v522_v38  ;;  %v564_v40 = vunpack.c.h.bf16 %v522_v38 }
 0x13c   :  { %v786_v41 = vpop.f32.mrf.mxu1 }
 0x13d   :  { %2540 = vtanh.f32 %v563_v39  ;;  %v787_v43 = vadd.f32 %v3211_v37, %v786_v41  ;;  %v2409_v41 = vld [vmem:[%s4262_s0 + $0xa0] sm:$0xff] }
 0x13e   :  { %2542 = vtanh.f32 %v564_v40  ;;  %v403_v45 = vpop.f32.mrf.mxu0 }
 0x13f   :  { %v944_v46 = vpack.c.bf16 %v787_v43, %v785_v42  ;;  %v404_v53 = vadd.f32 %v3119_v34, %v403_v45 }
 0x140   :  { %v904_v47 = vpop.f32.mrf.mxu3 }
 0x141   :  { %v976_v48 = vunpack.c.l.bf16 %v944_v46  ;;  %v977_v49 = vunpack.c.h.bf16 %v944_v46  ;;  %442 = vmatmul.bf16.gmra.mxu0 %v2407_v44  ;;  %v905_v59 = vadd.f32 %v3211_v37, %v904_v47 }
 0x143   :  { %v2541_v50 = vpop.eup %2540  ;;  %2544 = vtanh.f32 %v976_v48 }
 0x144   :  { %v2543_v51 = vpop.eup %2542  ;;  %2546 = vtanh.f32 %v977_v49  ;;  %v789_v52 = vpop.f32.mrf.mxu1 }
 0x145   :  { %v682_v54 = vpack.c.bf16 %v2543_v51, %v2541_v50  ;;  %v790_v3 = vadd.f32 %v3211_v37, %v789_v52 }
 0x146   :  { %v405_v55 = vpop.f32.mrf.mxu0 }
 0x147   :  { %v406_v56 = vadd.f32 %v3119_v34, %v405_v55  ;;  %828 = vmatmul.bf16.gmra.mxu1 %v682_v54 }
 0x148   :  { %v906_v57 = vpop.f32.mrf.mxu3 }
 0x149   :  { %v2545_v58 = vpop.eup %2544  ;;  %v523_v60 = vpack.c.bf16 %v406_v56, %v404_v53  ;;  %v907_v61 = vadd.f32 %v3211_v37, %v906_v57 }
 0x14a   :  { %v2547_v62 = vpop.eup %2546 }
 0x14b   :  { %v565_v63 = vunpack.c.l.bf16 %v523_v60  ;;  %v566_v0 = vunpack.c.h.bf16 %v523_v60  ;;  %v968_v1 = vpack.c.bf16 %v907_v61, %v905_v59  ;;  %v1104_v2 = vpack.c.bf16 %v2547_v62, %v2545_v58 }
 0x14c   :  { %v791_v4 = vpop.f32.mrf.mxu1 }
 0x14d   :  { %2548 = vtanh.f32 %v565_v63  ;;  %v1024_v5 = vunpack.c.l.bf16 %v968_v1  ;;  %v1025_v6 = vunpack.c.h.bf16 %v968_v1  ;;  %v792_v7 = vadd.f32 %v3211_v37, %v791_v4  ;;  %1212 = vmatmul.bf16.vlgmr.msra.gmra.mxu2 %v1104_v2 }
 0x14e   :  { %2550 = vtanh.f32 %v566_v0  ;;  %v408_v9 = vpop.f32.mrf.mxu0 }
 0x14f   :  { %2552 = vtanh.f32 %v1024_v5  ;;  %v945_v10 = vpack.c.bf16 %v792_v7, %v790_v3  ;;  %v409_v18 = vadd.f32 %v3119_v34, %v408_v9 }
 0x150   :  { %2554 = vtanh.f32 %v1025_v6  ;;  %v909_v11 = vpop.f32.mrf.mxu3 }
 0x151   :  { %v978_v12 = vunpack.c.l.bf16 %v945_v10  ;;  %v979_v13 = vunpack.c.h.bf16 %v945_v10  ;;  %447 = vmatmul.bf16.gmra.mxu0 %v2408_v8  ;;  %v910_v26 = vadd.f32 %v3211_v37, %v909_v11  ;;  %v2410_v8 = vld [vmem:[%s4262_s0 + $0xa8] sm:$0xff] }
 0x153   :  { %v2549_v14 = vpop.eup %2548  ;;  %2556 = vtanh.f32 %v978_v12 }
 0x154   :  { %v2551_v15 = vpop.eup %2550  ;;  %2558 = vtanh.f32 %v979_v13  ;;  %v794_v16 = vpop.f32.mrf.mxu1 }
 0x155   :  { %v2553_v17 = vpop.eup %2552  ;;  %v683_v19 = vpack.c.bf16 %v2551_v15, %v2549_v14  ;;  %v795_v35 = vadd.f32 %v3211_v37, %v794_v16 }
 0x156   :  { %v2555_v20 = vpop.eup %2554  ;;  %v410_v21 = vpop.f32.mrf.mxu0 }
 0x157   :  { %v411_v22 = vadd.f32 %v3119_v34, %v410_v21  ;;  %833 = vmatmul.bf16.gmra.mxu1 %v683_v19  ;;  %v1128_v23 = vpack.c.bf16 %v2555_v20, %v2553_v17 }
 0x158   :  { %v911_v24 = vpop.f32.mrf.mxu3 }
 0x159   :  { %v2557_v25 = vpop.eup %2556  ;;  %v524_v27 = vpack.c.bf16 %v411_v22, %v409_v18  ;;  %v912_v28 = vadd.f32 %v3211_v37, %v911_v24  ;;  %1332 = vmatmul.bf16.vlgmr.msra.gmra.mxu3 %v1128_v23 }
 0x15a   :  { %v2559_v29 = vpop.eup %2558 }
 0x15b   :  { %v567_v30 = vunpack.c.l.bf16 %v524_v27  ;;  %v568_v31 = vunpack.c.h.bf16 %v524_v27  ;;  %v969_v32 = vpack.c.bf16 %v912_v28, %v910_v26  ;;  %v1105_v33 = vpack.c.bf16 %v2559_v29, %v2557_v25 }
 0x15c   :  { %v796_v36 = vpop.f32.mrf.mxu1 }
 0x15d   :  { %2560 = vtanh.f32 %v567_v30  ;;  %v1026_v38 = vunpack.c.l.bf16 %v969_v32  ;;  %v1027_v39 = vunpack.c.h.bf16 %v969_v32  ;;  %v797_v40 = vadd.f32 %v3211_v37, %v796_v36  ;;  %1217 = vmatmul.bf16.gmra.mxu2 %v1105_v33 }
 0x15e   :  { %2562 = vtanh.f32 %v568_v31  ;;  %v413_v42 = vpop.f32.mrf.mxu0 }
 0x15f   :  { %2564 = vtanh.f32 %v1026_v38  ;;  %v946_v43 = vpack.c.bf16 %v797_v40, %v795_v35  ;;  %v414_v51 = vadd.f32 %v3119_v34, %v413_v42 }
 0x160   :  { %2566 = vtanh.f32 %v1027_v39  ;;  %v914_v44 = vpop.f32.mrf.mxu3 }
 0x161   :  { %v980_v45 = vunpack.c.l.bf16 %v946_v43  ;;  %v981_v46 = vunpack.c.h.bf16 %v946_v43  ;;  %452 = vmatmul.bf16.gmra.mxu0 %v2409_v41  ;;  %v915_v59 = vadd.f32 %v3211_v37, %v914_v44  ;;  %v2411_v41 = vld [vmem:[%s4262_s0 + $0xb0] sm:$0xff] }
 0x163   :  { %v2561_v47 = vpop.eup %2560  ;;  %2568 = vtanh.f32 %v980_v45 }
 0x164   :  { %v2563_v48 = vpop.eup %2562  ;;  %2570 = vtanh.f32 %v981_v46  ;;  %v799_v49 = vpop.f32.mrf.mxu1 }
 0x165   :  { %v2565_v50 = vpop.eup %2564  ;;  %v684_v52 = vpack.c.bf16 %v2563_v48, %v2561_v47  ;;  %v800_v3 = vadd.f32 %v3211_v37, %v799_v49 }
 0x166   :  { %v2567_v53 = vpop.eup %2566  ;;  %v415_v54 = vpop.f32.mrf.mxu0 }
 0x167   :  { %v416_v55 = vadd.f32 %v3119_v34, %v415_v54  ;;  %838 = vmatmul.bf16.gmra.mxu1 %v684_v52  ;;  %v1129_v56 = vpack.c.bf16 %v2567_v53, %v2565_v50 }
 0x168   :  { %v916_v57 = vpop.f32.mrf.mxu3 }
 0x169   :  { %v2569_v58 = vpop.eup %2568  ;;  %v525_v60 = vpack.c.bf16 %v416_v55, %v414_v51  ;;  %v917_v61 = vadd.f32 %v3211_v37, %v916_v57  ;;  %1337 = vmatmul.bf16.gmra.mxu3 %v1129_v56 }
 0x16a   :  { %v2571_v62 = vpop.eup %2570 }
 0x16b   :  { %v569_v63 = vunpack.c.l.bf16 %v525_v60  ;;  %v570_v0 = vunpack.c.h.bf16 %v525_v60  ;;  %v970_v1 = vpack.c.bf16 %v917_v61, %v915_v59  ;;  %v1106_v2 = vpack.c.bf16 %v2571_v62, %v2569_v58 }
 0x16c   :  { %v801_v4 = vpop.f32.mrf.mxu1 }
 0x16d   :  { %2572 = vtanh.f32 %v569_v63  ;;  %v1028_v5 = vunpack.c.l.bf16 %v970_v1  ;;  %v1029_v6 = vunpack.c.h.bf16 %v970_v1  ;;  %v802_v7 = vadd.f32 %v3211_v37, %v801_v4  ;;  %1222 = vmatmul.bf16.gmra.mxu2 %v1106_v2 }
 0x16e   :  { %2574 = vtanh.f32 %v570_v0  ;;  %v418_v9 = vpop.f32.mrf.mxu0 }
 0x16f   :  { %2576 = vtanh.f32 %v1028_v5  ;;  %v947_v10 = vpack.c.bf16 %v802_v7, %v800_v3  ;;  %v419_v18 = vadd.f32 %v3119_v34, %v418_v9 }
 0x170   :  { %2578 = vtanh.f32 %v1029_v6  ;;  %v919_v11 = vpop.f32.mrf.mxu3 }
 0x171   :  { %v982_v12 = vunpack.c.l.bf16 %v947_v10  ;;  %v983_v13 = vunpack.c.h.bf16 %v947_v10  ;;  %457 = vmatmul.bf16.gmra.mxu0 %v2410_v8  ;;  %v920_v26 = vadd.f32 %v3211_v37, %v919_v11  ;;  %v2412_v8 = vld [vmem:[%s4262_s0 + $0xb8] sm:$0xff] }
 0x173   :  { %v2573_v14 = vpop.eup %2572  ;;  %2580 = vtanh.f32 %v982_v12 }
 0x174   :  { %v2575_v15 = vpop.eup %2574  ;;  %2582 = vtanh.f32 %v983_v13  ;;  %v804_v16 = vpop.f32.mrf.mxu1 }
 0x175   :  { %v2577_v17 = vpop.eup %2576  ;;  %v685_v19 = vpack.c.bf16 %v2575_v15, %v2573_v14  ;;  %v805_v35 = vadd.f32 %v3211_v37, %v804_v16 }
 0x176   :  { %v2579_v20 = vpop.eup %2578  ;;  %v420_v21 = vpop.f32.mrf.mxu0 }
 0x177   :  { %v421_v22 = vadd.f32 %v3119_v34, %v420_v21  ;;  %843 = vmatmul.bf16.gmra.mxu1 %v685_v19  ;;  %v1130_v23 = vpack.c.bf16 %v2579_v20, %v2577_v17 }
 0x178   :  { %v921_v24 = vpop.f32.mrf.mxu3 }
 0x179   :  { %v2581_v25 = vpop.eup %2580  ;;  %v526_v27 = vpack.c.bf16 %v421_v22, %v419_v18  ;;  %v922_v28 = vadd.f32 %v3211_v37, %v921_v24  ;;  %1342 = vmatmul.bf16.gmra.mxu3 %v1130_v23 }
 0x17a   :  { %v2583_v29 = vpop.eup %2582 }
 0x17b   :  { %v571_v30 = vunpack.c.l.bf16 %v526_v27  ;;  %v572_v31 = vunpack.c.h.bf16 %v526_v27  ;;  %v971_v32 = vpack.c.bf16 %v922_v28, %v920_v26  ;;  %v1107_v33 = vpack.c.bf16 %v2583_v29, %v2581_v25 }
 0x17c   :  { %v806_v36 = vpop.f32.mrf.mxu1 }
 0x17d   :  { %2584 = vtanh.f32 %v571_v30  ;;  %v1030_v38 = vunpack.c.l.bf16 %v971_v32  ;;  %v1031_v39 = vunpack.c.h.bf16 %v971_v32  ;;  %v807_v40 = vadd.f32 %v3211_v37, %v806_v36  ;;  %1227 = vmatmul.bf16.gmra.mxu2 %v1107_v33 }
 0x17e   :  { %2586 = vtanh.f32 %v572_v31  ;;  %v423_v42 = vpop.f32.mrf.mxu0 }
 0x17f   :  { %2588 = vtanh.f32 %v1030_v38  ;;  %v948_v43 = vpack.c.bf16 %v807_v40, %v805_v35  ;;  %v424_v51 = vadd.f32 %v3119_v34, %v423_v42 }
 0x180   :  { %2590 = vtanh.f32 %v1031_v39  ;;  %v924_v44 = vpop.f32.mrf.mxu3 }
 0x181   :  { %v984_v45 = vunpack.c.l.bf16 %v948_v43  ;;  %v985_v46 = vunpack.c.h.bf16 %v948_v43  ;;  %462 = vmatmul.bf16.gmra.mxu0 %v2411_v41  ;;  %v925_v59 = vadd.f32 %v3211_v37, %v924_v44 }
 0x183   :  { %v2585_v47 = vpop.eup %2584  ;;  %2592 = vtanh.f32 %v984_v45 }
 0x184   :  { %v2587_v48 = vpop.eup %2586  ;;  %2594 = vtanh.f32 %v985_v46  ;;  %v809_v49 = vpop.f32.mrf.mxu1 }
 0x185   :  { %v2589_v50 = vpop.eup %2588  ;;  %v686_v52 = vpack.c.bf16 %v2587_v48, %v2585_v47  ;;  %v810_v3 = vadd.f32 %v3211_v37, %v809_v49  ;;  %v3272_v49 = vld [vmem:[%s4261_s2] ss:$0 sm:$0xff] }
 0x186   :  { %v2591_v53 = vpop.eup %2590  ;;  %v425_v54 = vpop.f32.mrf.mxu0 }
 0x187   :  { %v426_v55 = vadd.f32 %v3119_v34, %v425_v54  ;;  %848 = vmatmul.bf16.gmra.mxu1 %v686_v52  ;;  %v1131_v56 = vpack.c.bf16 %v2591_v53, %v2589_v50 }
 0x188   :  { %v926_v57 = vpop.f32.mrf.mxu3 }
 0x189   :  { %v2593_v58 = vpop.eup %2592  ;;  %v527_v60 = vpack.c.bf16 %v426_v55, %v424_v51  ;;  %v927_v61 = vadd.f32 %v3211_v37, %v926_v57  ;;  %1347 = vmatmul.bf16.gmra.mxu3 %v1131_v56 }
 0x18a   :  { %v2595_v62 = vpop.eup %2594 }
 0x18b   :  { %v573_v63 = vunpack.c.l.bf16 %v527_v60  ;;  %v574_v0 = vunpack.c.h.bf16 %v527_v60  ;;  %v972_v1 = vpack.c.bf16 %v927_v61, %v925_v59  ;;  %v1108_v2 = vpack.c.bf16 %v2595_v62, %v2593_v58 }
 0x18c   :  { %v811_v4 = vpop.f32.mrf.mxu1 }
 0x18d   :  { %2596 = vtanh.f32 %v573_v63  ;;  %v1032_v5 = vunpack.c.l.bf16 %v972_v1  ;;  %v1033_v6 = vunpack.c.h.bf16 %v972_v1  ;;  %v812_v7 = vadd.f32 %v3211_v37, %v811_v4  ;;  %1232 = vmatmul.bf16.gmra.mxu2 %v1108_v2 }
 0x18e   :  { %2598 = vtanh.f32 %v574_v0  ;;  %v428_v9 = vpop.f32.mrf.mxu0 }
 0x18f   :  { %2600 = vtanh.f32 %v1032_v5  ;;  %v949_v10 = vpack.c.bf16 %v812_v7, %v810_v3  ;;  %v429_v18 = vadd.f32 %v3119_v34, %v428_v9 }
 0x190   :  { %2602 = vtanh.f32 %v1033_v6  ;;  %v929_v11 = vpop.f32.mrf.mxu3 }
 0x191   :  { %v986_v12 = vunpack.c.l.bf16 %v949_v10  ;;  %v987_v13 = vunpack.c.h.bf16 %v949_v10  ;;  %467 = vmatmul.bf16.gmra.mxu0 %v2412_v8  ;;  %v930_v26 = vadd.f32 %v3211_v37, %v929_v11 }
 0x193   :  { %v2597_v14 = vpop.eup %2596  ;;  %2604 = vtanh.f32 %v986_v12 }
 0x194   :  { %v2599_v15 = vpop.eup %2598  ;;  %2606 = vtanh.f32 %v987_v13  ;;  %v814_v16 = vpop.f32.mrf.mxu1 }
 0x195   :  { %v2601_v17 = vpop.eup %2600  ;;  %v687_v19 = vpack.c.bf16 %v2599_v15, %v2597_v14  ;;  %v815_v35 = vadd.f32 %v3211_v37, %v814_v16 }
 0x196   :  { %v2603_v20 = vpop.eup %2602  ;;  %v430_v21 = vpop.f32.mrf.mxu0 }
 0x197   :  { %v431_v22 = vadd.f32 %v3119_v34, %v430_v21  ;;  %853 = vmatmul.bf16.gmra.mxu1 %v687_v19  ;;  %v1132_v23 = vpack.c.bf16 %v2603_v20, %v2601_v17 }
 0x198   :  { %v931_v24 = vpop.f32.mrf.mxu3 }
 0x199   :  { %v2605_v25 = vpop.eup %2604  ;;  %v528_v27 = vpack.c.bf16 %v431_v22, %v429_v18  ;;  %v932_v28 = vadd.f32 %v3211_v37, %v931_v24  ;;  %1352 = vmatmul.bf16.gmra.mxu3 %v1132_v23 }
 0x19a   :  { %v2607_v29 = vpop.eup %2606 }
 0x19b   :  { %v575_v30 = vunpack.c.l.bf16 %v528_v27  ;;  %v576_v31 = vunpack.c.h.bf16 %v528_v27  ;;  %v973_v32 = vpack.c.bf16 %v932_v28, %v930_v26  ;;  %v1109_v33 = vpack.c.bf16 %v2607_v29, %v2605_v25 }
 0x19c   :  { %v816_v36 = vpop.f32.mrf.mxu1 }
 0x19d   :  { %2608 = vtanh.f32 %v575_v30  ;;  %v1034_v34 = vunpack.c.l.bf16 %v973_v32  ;;  %v1035_v38 = vunpack.c.h.bf16 %v973_v32  ;;  %v817_v39 = vadd.f32 %v3211_v37, %v816_v36  ;;  %1237 = vmatmul.bf16.gmra.mxu2 %v1109_v33 }
 0x19e   :  { %2610 = vtanh.f32 %v576_v31  ;;  %v433_v40 = vpop.f32.mrf.mxu0 }
 0x19f   :  { %2612 = vtanh.f32 %v1034_v34  ;;  %v950_v41 = vpack.c.bf16 %v817_v39, %v815_v35  ;;  %v434_v50 = vadd.f32 %v3272_v49, %v433_v40 }
 0x1a0   :  { %2614 = vtanh.f32 %v1035_v38  ;;  %v934_v42 = vpop.f32.mrf.mxu3 }
 0x1a1   :  { %v988_v43 = vunpack.c.l.bf16 %v950_v41  ;;  %v989_v44 = vunpack.c.h.bf16 %v950_v41  ;;  %v935_v58 = vadd.f32 %v3211_v37, %v934_v42 }
 0x1a3   :  { %v2609_v45 = vpop.eup %2608  ;;  %2616 = vtanh.f32 %v988_v43 }
 0x1a4   :  { %v2611_v46 = vpop.eup %2610  ;;  %2618 = vtanh.f32 %v989_v44  ;;  %v819_v47 = vpop.f32.mrf.mxu1 }
 0x1a5   :  { %v2613_v48 = vpop.eup %2612  ;;  %v688_v51 = vpack.c.bf16 %v2611_v46, %v2609_v45  ;;  %v820_v2 = vadd.f32 %v3211_v37, %v819_v47 }
 0x1a6   :  { %v2615_v52 = vpop.eup %2614  ;;  %v435_v53 = vpop.f32.mrf.mxu0 }
 0x1a7   :  { %v436_v54 = vadd.f32 %v3272_v49, %v435_v53  ;;  %858 = vmatmul.bf16.gmra.mxu1 %v688_v51  ;;  %v1133_v55 = vpack.c.bf16 %v2615_v52, %v2613_v48  ;;  %v1373_v53 = vlaneseq }
 0x1a8   :  { %v936_v56 = vpop.f32.mrf.mxu3 }
 0x1a9   :  { %v2617_v57 = vpop.eup %2616  ;;  %v529_v59 = vpack.c.bf16 %v436_v54, %v434_v50  ;;  %v937_v60 = vadd.f32 %v3211_v37, %v936_v56  ;;  %1357 = vmatmul.bf16.gmra.mxu3 %v1133_v55 }
 0x1aa   :  { %v2619_v61 = vpop.eup %2618 }
 0x1ab   :  { %v577_v62 = vunpack.c.l.bf16 %v529_v59  ;;  %v578_v63 = vunpack.c.h.bf16 %v529_v59  ;;  %v974_v0 = vpack.c.bf16 %v937_v60, %v935_v58  ;;  %v1110_v1 = vpack.c.bf16 %v2619_v61, %v2617_v57 }
 0x1ac   :  { %v821_v3 = vpop.f32.mrf.mxu1  ;;  %v3288_v61 = vand.u32 127, %v1373_v53 }
 0x1ad   :  { %2620 = vtanh.f32 %v577_v62  ;;  %v1036_v4 = vunpack.c.l.bf16 %v974_v0  ;;  %v1037_v5 = vunpack.c.h.bf16 %v974_v0  ;;  %v822_v6 = vadd.f32 %v3211_v37, %v821_v3  ;;  %1242 = vmatmul.bf16.gmra.mxu2 %v1110_v1  ;;  %v3295_v0 = vld [vmem:[%s4264_s4] ss:$0 sm:$0xff] }
 0x1ae   :  { %2622 = vtanh.f32 %v578_v63  ;;  %v438_v7 = vpop.f32.mrf.mxu0  ;;  %vm1375_vm0 = vcmp.lt.s32.totalorder %v3288_v61, 4 }
 0x1af   :  { %2624 = vtanh.f32 %v1036_v4  ;;  %v951_v8 = vpack.c.bf16 %v822_v6, %v820_v2  ;;  %v439_v16 = vadd.f32 %v3272_v49, %v438_v7 }
 0x1b0   :  { %2626 = vtanh.f32 %v1037_v5  ;;  %v939_v9 = vpop.f32.mrf.mxu3 }
 0x1b1   :  { %v990_v10 = vunpack.c.l.bf16 %v951_v8  ;;  %v991_v11 = vunpack.c.h.bf16 %v951_v8  ;;  %v940_v20 = vadd.f32 %v3211_v37, %v939_v9 }
 0x1b3   :  { %v2621_v12 = vpop.eup %2620  ;;  %2628 = vtanh.f32 %v990_v10 }
 0x1b4   :  { %v2623_v13 = vpop.eup %2622  ;;  %2630 = vtanh.f32 %v991_v11  ;;  %v824_v14 = vpop.f32.mrf.mxu1 }
 0x1b5   :  { %v2625_v15 = vpop.eup %2624  ;;  %v689_v17 = vpack.c.bf16 %v2623_v13, %v2621_v12  ;;  %v825_v32 = vadd.f32 %v3211_v37, %v824_v14 }
 0x1b6   :  { %v2627_v18 = vpop.eup %2626  ;;  %v440_v19 = vpop.f32.mrf.mxu0 }
 0x1b7   :  { %v441_v21 = vadd.f32 %v3272_v49, %v440_v19  ;;  %863 = vmatmul.bf16.gmra.mxu1 %v689_v17  ;;  %v1134_v22 = vpack.c.bf16 %v2627_v18, %v2625_v15 }
 0x1b8   :  { %v941_v23 = vpop.f32.mrf.mxu3 }
 0x1b9   :  { %v2629_v24 = vpop.eup %2628  ;;  %v530_v25 = vpack.c.bf16 %v441_v21, %v439_v16  ;;  %v942_v26 = vadd.f32 %v3211_v37, %v941_v23  ;;  %1362 = vmatmul.bf16.gmra.mxu3 %v1134_v22 }
 0x1ba   :  { %v2631_v27 = vpop.eup %2630 }
 0x1bb   :  { %v579_v28 = vunpack.c.l.bf16 %v530_v25  ;;  %v580_v29 = vunpack.c.h.bf16 %v530_v25  ;;  %v975_v30 = vpack.c.bf16 %v942_v26, %v940_v20  ;;  %v1111_v31 = vpack.c.bf16 %v2631_v27, %v2629_v24 }
 0x1bc   :  { %v826_v33 = vpop.f32.mrf.mxu1 }
 0x1bd   :  { %2632 = vtanh.f32 %v579_v28  ;;  %v1038_v35 = vunpack.c.l.bf16 %v975_v30  ;;  %v1039_v36 = vunpack.c.h.bf16 %v975_v30  ;;  %v827_v34 = vadd.f32 %v3211_v37, %v826_v33  ;;  %1247 = vmatmul.bf16.gmra.mxu2 %v1111_v31 }
 0x1be   :  { %2634 = vtanh.f32 %v580_v29  ;;  %v443_v38 = vpop.f32.mrf.mxu0 }
 0x1bf   :  { %2636 = vtanh.f32 %v1038_v35  ;;  %v952_v39 = vpack.c.bf16 %v827_v34, %v825_v32  ;;  %v444_v46 = vadd.f32 %v3272_v49, %v443_v38 }
 0x1c0   :  { %2638 = vtanh.f32 %v1039_v36 }
 0x1c1   :  { %v992_v40 = vunpack.c.l.bf16 %v952_v39  ;;  %v993_v41 = vunpack.c.h.bf16 %v952_v39 }
 0x1c3   :  { %v2633_v42 = vpop.eup %2632  ;;  %2640 = vtanh.f32 %v992_v40 }
 0x1c4   :  { %v2635_v43 = vpop.eup %2634  ;;  %2642 = vtanh.f32 %v993_v41  ;;  %v829_v44 = vpop.f32.mrf.mxu1 }
 0x1c5   :  { %v2637_v45 = vpop.eup %2636  ;;  %v690_v47 = vpack.c.bf16 %v2635_v43, %v2633_v42  ;;  %v830_v62 = vadd.f32 %v3211_v37, %v829_v44 }
 0x1c6   :  { %v2639_v48 = vpop.eup %2638  ;;  %v445_v50 = vpop.f32.mrf.mxu0 }
 0x1c7   :  { %v446_v51 = vadd.f32 %v3272_v49, %v445_v50  ;;  %868 = vmatmul.bf16.gmra.mxu1 %v690_v47  ;;  %v1135_v52 = vpack.c.bf16 %v2639_v48, %v2637_v45 }
 0x1c9   :  { %v2641_v54 = vpop.eup %2640  ;;  %v531_v55 = vpack.c.bf16 %v446_v51, %v444_v46  ;;  %1367 = vmatmul.bf16.gmra.mxu3 %v1135_v52 }
 0x1ca   :  { %v2643_v56 = vpop.eup %2642 }
 0x1cb   :  { %v581_v57 = vunpack.c.l.bf16 %v531_v55  ;;  %v582_v58 = vunpack.c.h.bf16 %v531_v55  ;;  %v1112_v59 = vpack.c.bf16 %v2643_v56, %v2641_v54 }
 0x1cc   :  { %v831_v60 = vpop.f32.mrf.mxu1 }
 0x1cd   :  { %2644 = vtanh.f32 %v581_v57  ;;  %v832_v63 = vadd.f32 %v3211_v37, %v831_v60  ;;  %1252 = vmatmul.bf16.gmra.mxu2 %v1112_v59 }
 0x1ce   :  { %2646 = vtanh.f32 %v582_v58  ;;  %v448_v1 = vpop.f32.mrf.mxu0 }
 0x1cf   :  { %v953_v2 = vpack.c.bf16 %v832_v63, %v830_v62  ;;  %v449_v11 = vadd.f32 %v3272_v49, %v448_v1 }
 0x1d0   :  { %v1213_v3 = vpop.f32.mrf.mxu2 }
 0x1d1   :  { %v994_v4 = vunpack.c.l.bf16 %v953_v2  ;;  %v995_v5 = vunpack.c.h.bf16 %v953_v2  ;;  %v1214_v6 = vadd.f32 %v3295_v0, %v1213_v3 }
 0x1d3   :  { %v2645_v7 = vpop.eup %2644  ;;  %2648 = vtanh.f32 %v994_v4  ;;  %v3301_v8 = vsel %vm1375_vm0, %v1214_v6, -inf }
 0x1d4   :  { %v2647_v9 = vpop.eup %2646  ;;  %2650 = vtanh.f32 %v995_v5  ;;  %1440 = vmax.xlane.f32.xlu0 %v3301_v8  ;;  %v834_v10 = vpop.f32.mrf.mxu1 }
 0x1d5   :  { %v691_v12 = vpack.c.bf16 %v2647_v9, %v2645_v7  ;;  %v835_v26 = vadd.f32 %v3211_v37, %v834_v10 }
 0x1d6   :  { %v450_v13 = vpop.f32.mrf.mxu0 }
 0x1d7   :  { %v451_v14 = vadd.f32 %v3272_v49, %v450_v13  ;;  %873 = vmatmul.bf16.gmra.mxu1 %v691_v12 }
 0x1d8   :  { %v1215_v15 = vpop.f32.mrf.mxu2 }
 0x1d9   :  { %v2649_v16 = vpop.eup %2648  ;;  %v532_v17 = vpack.c.bf16 %v451_v14, %v449_v11  ;;  %v1216_v18 = vadd.f32 %v3295_v0, %v1215_v15 }
 0x1da   :  { %v2651_v19 = vpop.eup %2650 }
 0x1db   :  { %v583_v20 = vunpack.c.l.bf16 %v532_v17  ;;  %v584_v21 = vunpack.c.h.bf16 %v532_v17  ;;  %v3309_v22 = vsel %vm1375_vm0, %v1216_v18, -inf  ;;  %v1113_v23 = vpack.c.bf16 %v2651_v19, %v2649_v16 }
 0x1dc   :  { %v1333_v24 = vpop.f32.mrf.mxu3  ;;  %1442 = vmax.xlane.f32.xlu0 %v3309_v22  ;;  %v836_v25 = vpop.f32.mrf.mxu1 }
 0x1dd   :  { %2652 = vtanh.f32 %v583_v20  ;;  %v837_v27 = vadd.f32 %v3211_v37, %v836_v25  ;;  %1257 = vmatmul.bf16.gmra.mxu2 %v1113_v23  ;;  %v1334_v29 = vadd.f32 %v3295_v0, %v1333_v24 }
 0x1de   :  { %2654 = vtanh.f32 %v584_v21  ;;  %v453_v28 = vpop.f32.mrf.mxu0 }
 0x1df   :  { %v954_v30 = vpack.c.bf16 %v837_v27, %v835_v26  ;;  %v3322_v38 = vsel %vm1375_vm0, %v1334_v29, -inf  ;;  %v454_v42 = vadd.f32 %v3272_v49, %v453_v28 }
 0x1e0   :  { %v1218_v31 = vpop.f32.mrf.mxu2 }
 0x1e1   :  { %v996_v32 = vunpack.c.l.bf16 %v954_v30  ;;  %v997_v33 = vunpack.c.h.bf16 %v954_v30  ;;  %v1219_v35 = vadd.f32 %v3295_v0, %v1218_v31 }
 0x1e3   :  { %v2653_v36 = vpop.eup %2652  ;;  %2656 = vtanh.f32 %v996_v32  ;;  %v3318_v34 = vsel %vm1375_vm0, %v1219_v35, -inf }
 0x1e4   :  { %v2655_v39 = vpop.eup %2654  ;;  %2658 = vtanh.f32 %v997_v33  ;;  %v1335_v40 = vpop.f32.mrf.mxu3  ;;  %1444 = vmax.xlane.f32.xlu1 %v3318_v34  ;;  %1536 = vmax.xlane.f32.xlu0 %v3322_v38 }
 0x1e5   :  { %v839_v41 = vpop.f32.mrf.mxu1  ;;  %v692_v43 = vpack.c.bf16 %v2655_v39, %v2653_v36  ;;  %v1336_v45 = vadd.f32 %v3295_v0, %v1335_v40 }
 0x1e6   :  { %v455_v44 = vpop.f32.mrf.mxu0  ;;  %v840_v58 = vadd.f32 %v3211_v37, %v839_v41 }
 0x1e7   :  { %v456_v46 = vadd.f32 %v3272_v49, %v455_v44  ;;  %878 = vmatmul.bf16.gmra.mxu1 %v692_v43  ;;  %v3331_v54 = vsel %vm1375_vm0, %v1336_v45, -inf }
 0x1e8   :  { %v1220_v47 = vpop.f32.mrf.mxu2 }
 0x1e9   :  { %v2657_v48 = vpop.eup %2656  ;;  %v533_v50 = vpack.c.bf16 %v456_v46, %v454_v42  ;;  %v1221_v63 = vadd.f32 %v3295_v0, %v1220_v47 }
 0x1ea   :  { %v2659_v51 = vpop.eup %2658 }
 0x1eb   :  { %v585_v52 = vunpack.c.l.bf16 %v533_v50  ;;  %v586_v53 = vunpack.c.h.bf16 %v533_v50  ;;  %v1114_v55 = vpack.c.bf16 %v2659_v51, %v2657_v48  ;;  %v3346_v9 = vsel %vm1375_vm0, %v1221_v63, -inf }
 0x1ec   :  { %v1338_v56 = vpop.f32.mrf.mxu3  ;;  %1538 = vmax.xlane.f32.xlu1 %v3331_v54 }
 0x1ed   :  { %v841_v57 = vpop.f32.mrf.mxu1  ;;  %2660 = vtanh.f32 %v585_v52  ;;  %v1339_v59 = vadd.f32 %v3295_v0, %v1338_v56  ;;  %1262 = vmatmul.bf16.gmra.mxu2 %v1114_v55 }
 0x1ee   :  { %v842_v60 = vadd.f32 %v3211_v37, %v841_v57  ;;  %2662 = vtanh.f32 %v586_v53  ;;  %v458_v62 = vpop.f32.mrf.mxu0 }
 0x1ef   :  { %v3340_v2 = vsel %vm1375_vm0, %v1339_v59, -inf  ;;  %v459_v13 = vadd.f32 %v3272_v49, %v458_v62 }
 0x1f0   :  { %v955_v1 = vpack.c.bf16 %v842_v60, %v840_v58  ;;  %1540 = vmax.xlane.f32.xlu2 %v3340_v2  ;;  %v1223_v3 = vpop.f32.mrf.mxu2 }
 0x1f1   :  { %v1224_v7 = vadd.f32 %v3295_v0, %v1223_v3 }
 0x1f2   :  { %v998_v4 = vunpack.c.l.bf16 %v955_v1  ;;  %v999_v5 = vunpack.c.h.bf16 %v955_v1 }
 0x1f3   :  { %v2661_v6 = vpop.eup %2660  ;;  %v3354_v18 = vsel %vm1375_vm0, %v1224_v7, -inf  ;;  %v3399_v7 = vld [vmem:[%s4261_s2 + $0x1] ss:$0 sm:$0xff] }
 0x1f4   :  { %2664 = vtanh.f32 %v998_v4  ;;  %v2663_v10 = vpop.eup %2662  ;;  %v1340_v11 = vpop.f32.mrf.mxu3  ;;  %1446 = vmax.xlane.f32.xlu1 %v3346_v9 }
 0x1f5   :  { %2666 = vtanh.f32 %v999_v5  ;;  %v844_v12 = vpop.f32.mrf.mxu1  ;;  %v1341_v14 = vadd.f32 %v3295_v0, %v1340_v11  ;;  %v693_v15 = vpack.c.bf16 %v2663_v10, %v2661_v6 }
 0x1f6   :  { %v460_v16 = vpop.f32.mrf.mxu0  ;;  %v845_v31 = vadd.f32 %v3211_v37, %v844_v12 }
 0x1f7   :  { %v461_v17 = vadd.f32 %v3272_v49, %v460_v16  ;;  %883 = vmatmul.bf16.gmra.mxu1 %v693_v15  ;;  %v3358_v19 = vsel %vm1375_vm0, %v1341_v14, -inf }
 0x1f8   :  { %v1225_v20 = vpop.f32.mrf.mxu2  ;;  %1448 = vmax.xlane.f32.xlu2 %v3354_v18  ;;  %1542 = vmax.xlane.f32.xlu0 %v3358_v19 }
 0x1f9   :  { %v534_v23 = vpack.c.bf16 %v461_v17, %v459_v13  ;;  %v1226_v27 = vadd.f32 %v3295_v0, %v1225_v20 }
 0x1fa   :  { %v2665_v21 = vpop.eup %2664 }
 0x1fb   :  { %v2667_v24 = vpop.eup %2666  ;;  %v587_v25 = vunpack.c.l.bf16 %v534_v23  ;;  %v588_v26 = vunpack.c.h.bf16 %v534_v23  ;;  %v3368_v39 = vsel %vm1375_vm0, %v1226_v27, -inf }
 0x1fc   :  { %v1115_v28 = vpack.c.bf16 %v2667_v24, %v2665_v21  ;;  %v1343_v29 = vpop.f32.mrf.mxu3 }
 0x1fd   :  { %v846_v30 = vpop.f32.mrf.mxu1  ;;  %2668 = vtanh.f32 %v587_v25  ;;  %v1344_v32 = vadd.f32 %v3295_v0, %v1343_v29 }
 0x1fe   :  { %v847_v33 = vadd.f32 %v3211_v37, %v846_v30  ;;  %1267 = vmatmul.bf16.gmra.mxu2 %v1115_v28  ;;  %2670 = vtanh.f32 %v588_v26  ;;  %v463_v35 = vpop.f32.mrf.mxu0 }
 0x1ff   :  { %v3372_v40 = vsel %vm1375_vm0, %v1344_v32, -inf  ;;  %v464_v50 = vadd.f32 %v3272_v49, %v463_v35 }
 0x200   :  { %v956_v36 = vpack.c.bf16 %v847_v33, %v845_v31  ;;  %v1228_v41 = vpop.f32.mrf.mxu2  ;;  %1450 = vmax.xlane.f32.xlu2 %v3368_v39  ;;  %1544 = vmax.xlane.f32.xlu1 %v3372_v40 }
 0x201   :  { %v1229_v37 = vadd.f32 %v3295_v0, %v1228_v41 }
 0x202   :  { %v1000_v42 = vunpack.c.l.bf16 %v956_v36  ;;  %v1001_v43 = vunpack.c.h.bf16 %v956_v36 }
 0x203   :  { %v2669_v44 = vpop.eup %2668  ;;  %v3379_v45 = vsel %vm1375_vm0, %v1229_v37, -inf }
 0x204   :  { %2672 = vtanh.f32 %v1000_v42  ;;  %v2671_v46 = vpop.eup %2670  ;;  %v1345_v47 = vpop.f32.mrf.mxu3  ;;  %1452 = vmax.xlane.f32.xlu0 %v3379_v45 }
 0x205   :  { %2674 = vtanh.f32 %v1001_v43  ;;  %v849_v48 = vpop.f32.mrf.mxu1  ;;  %v1346_v51 = vadd.f32 %v3295_v0, %v1345_v47  ;;  %v694_v52 = vpack.c.bf16 %v2671_v46, %v2669_v44 }
 0x206   :  { %v465_v53 = vpop.f32.mrf.mxu0  ;;  %v850_v10 = vadd.f32 %v3399_v7, %v849_v48 }
 0x207   :  { %v466_v55 = vadd.f32 %v3272_v49, %v465_v53  ;;  %888 = vmatmul.bf16.gmra.mxu1 %v694_v52  ;;  %v3387_v56 = vsel %vm1375_vm0, %v1346_v51, -inf }
 0x208   :  { %v1230_v57 = vpop.f32.mrf.mxu2  ;;  %1546 = vmax.xlane.f32.xlu2 %v3387_v56 }
 0x209   :  { %v535_v59 = vpack.c.bf16 %v466_v55, %v464_v50  ;;  %v1231_v60 = vadd.f32 %v3295_v0, %v1230_v57 }
 0x20a   :  { %v2673_v58 = vpop.eup %2672 }
 0x20b   :  { %v2675_v62 = vpop.eup %2674  ;;  %v589_v63 = vunpack.c.l.bf16 %v535_v59  ;;  %v590_v1 = vunpack.c.h.bf16 %v535_v59  ;;  %v3393_v3 = vsel %vm1375_vm0, %v1231_v60, -inf }
 0x20c   :  { %v1116_v4 = vpack.c.bf16 %v2675_v62, %v2673_v58  ;;  %v1348_v5 = vpop.f32.mrf.mxu3  ;;  %1454 = vmax.xlane.f32.xlu1 %v3393_v3 }
 0x20d   :  { %v851_v6 = vpop.f32.mrf.mxu1  ;;  %2676 = vtanh.f32 %v589_v63  ;;  %v1349_v11 = vadd.f32 %v3295_v0, %v1348_v5 }
 0x20e   :  { %v852_v12 = vadd.f32 %v3399_v7, %v851_v6  ;;  %1272 = vmatmul.bf16.gmra.mxu2 %v1116_v4  ;;  %2678 = vtanh.f32 %v590_v1  ;;  %v468_v13 = vpop.f32.mrf.mxu0 }
 0x20f   :  { %v3406_v15 = vsel %vm1375_vm0, %v1349_v11, -inf  ;;  %v469_v28 = vadd.f32 %v3272_v49, %v468_v13 }
 0x210   :  { %v957_v14 = vpack.c.bf16 %v852_v12, %v850_v10  ;;  %v1233_v16 = vpop.f32.mrf.mxu2  ;;  %1548 = vmax.xlane.f32.xlu0 %v3406_v15 }
 0x211   :  { %v1234_v21 = vadd.f32 %v3295_v0, %v1233_v16 }
 0x212   :  { %v1002_v17 = vunpack.c.l.bf16 %v957_v14  ;;  %v1003_v20 = vunpack.c.h.bf16 %v957_v14 }
 0x213   :  { %v2677_v23 = vpop.eup %2676  ;;  %v3412_v24 = vsel %vm1375_vm0, %v1234_v21, -inf }
 0x214   :  { %2680 = vtanh.f32 %v1002_v17  ;;  %v2679_v25 = vpop.eup %2678  ;;  %v1350_v26 = vpop.f32.mrf.mxu3  ;;  %1456 = vmax.xlane.f32.xlu2 %v3412_v24 }
 0x215   :  { %2682 = vtanh.f32 %v1003_v20  ;;  %v854_v27 = vpop.f32.mrf.mxu1  ;;  %v1351_v29 = vadd.f32 %v3295_v0, %v1350_v26  ;;  %v695_v30 = vpack.c.bf16 %v2679_v25, %v2677_v23 }
 0x216   :  { %v470_v31 = vpop.f32.mrf.mxu0  ;;  %v855_v50 = vadd.f32 %v3399_v7, %v854_v27 }
 0x217   :  { %v471_v32 = vadd.f32 %v3272_v49, %v470_v31  ;;  %893 = vmatmul.bf16.gmra.mxu1 %v695_v30  ;;  %v3420_v33 = vsel %vm1375_vm0, %v1351_v29, -inf }
 0x218   :  { %v1235_v35 = vpop.f32.mrf.mxu2  ;;  %1550 = vmax.xlane.f32.xlu1 %v3420_v33 }
 0x219   :  { %v536_v41 = vpack.c.bf16 %v471_v32, %v469_v28  ;;  %v1236_v42 = vadd.f32 %v3295_v0, %v1235_v35 }
 0x21a   :  { %v2681_v36 = vpop.eup %2680 }
 0x21b   :  { %v2683_v43 = vpop.eup %2682  ;;  %v591_v37 = vunpack.c.l.bf16 %v536_v41  ;;  %v592_v44 = vunpack.c.h.bf16 %v536_v41  ;;  %v3426_v46 = vsel %vm1375_vm0, %v1236_v42, -inf }
 0x21c   :  { %v1117_v49 = vpack.c.bf16 %v2683_v43, %v2681_v36  ;;  %v1353_v47 = vpop.f32.mrf.mxu3  ;;  %1458 = vmax.xlane.f32.xlu0 %v3426_v46 }
 0x21d   :  { %v856_v48 = vpop.f32.mrf.mxu1  ;;  %2684 = vtanh.f32 %v591_v37  ;;  %v1354_v51 = vadd.f32 %v3295_v0, %v1353_v47 }
 0x21e   :  { %v857_v52 = vadd.f32 %v3399_v7, %v856_v48  ;;  %1277 = vmatmul.bf16.gmra.mxu2 %v1117_v49  ;;  %2686 = vtanh.f32 %v592_v44 }
 0x21f   :  { %v3434_v55 = vsel %vm1375_vm0, %v1354_v51, -inf }
 0x220   :  { %v958_v53 = vpack.c.bf16 %v857_v52, %v855_v50  ;;  %v1238_v57 = vpop.f32.mrf.mxu2  ;;  %1552 = vmax.xlane.f32.xlu2 %v3434_v55 }
 0x221   :  { %v1239_v60 = vadd.f32 %v3295_v0, %v1238_v57 }
 0x222   :  { %v1004_v58 = vunpack.c.l.bf16 %v958_v53  ;;  %v1005_v59 = vunpack.c.h.bf16 %v958_v53 }
 0x223   :  { %v2685_v62 = vpop.eup %2684  ;;  %v3440_v63 = vsel %vm1375_vm0, %v1239_v60, -inf }
 0x224   :  { %2688 = vtanh.f32 %v1004_v58  ;;  %v2687_v1 = vpop.eup %2686  ;;  %v1355_v4 = vpop.f32.mrf.mxu3  ;;  %1460 = vmax.xlane.f32.xlu1 %v3440_v63 }
 0x225   :  { %2690 = vtanh.f32 %v1005_v59  ;;  %v859_v5 = vpop.f32.mrf.mxu1  ;;  %v1356_v6 = vadd.f32 %v3295_v0, %v1355_v4  ;;  %v696_v10 = vpack.c.bf16 %v2687_v1, %v2685_v62 }
 0x226   :  { %v860_v25 = vadd.f32 %v3399_v7, %v859_v5 }
 0x227   :  { %898 = vmatmul.bf16.gmra.mxu1 %v696_v10  ;;  %v3446_v11 = vsel %vm1375_vm0, %v1356_v6, -inf }
 0x228   :  { %v1240_v12 = vpop.f32.mrf.mxu2  ;;  %1554 = vmax.xlane.f32.xlu0 %v3446_v11 }
 0x229   :  { %v1241_v14 = vadd.f32 %v3295_v0, %v1240_v12 }
 0x22a   :  { %v2689_v13 = vpop.eup %2688 }
 0x22b   :  { %v2691_v16 = vpop.eup %2690  ;;  %v3452_v17 = vsel %vm1375_vm0, %v1241_v14, -inf }
 0x22c   :  { %v1118_v20 = vpack.c.bf16 %v2691_v16, %v2689_v13  ;;  %v1358_v21 = vpop.f32.mrf.mxu3  ;;  %1462 = vmax.xlane.f32.xlu2 %v3452_v17 }
 0x22d   :  { %v861_v23 = vpop.f32.mrf.mxu1  ;;  %v1359_v26 = vadd.f32 %v3295_v0, %v1358_v21 }
 0x22e   :  { %v862_v27 = vadd.f32 %v3399_v7, %v861_v23  ;;  %1282 = vmatmul.bf16.gmra.mxu2 %v1118_v20 }
 0x22f   :  { %v3460_v29 = vsel %vm1375_vm0, %v1359_v26, -inf }
 0x230   :  { %v959_v28 = vpack.c.bf16 %v862_v27, %v860_v25  ;;  %v1243_v30 = vpop.f32.mrf.mxu2  ;;  %1556 = vmax.xlane.f32.xlu1 %v3460_v29 }
 0x231   :  { %v1244_v35 = vadd.f32 %v3295_v0, %v1243_v30 }
 0x232   :  { %v1006_v31 = vunpack.c.l.bf16 %v959_v28  ;;  %v1007_v32 = vunpack.c.h.bf16 %v959_v28 }
 0x233   :  { %v3466_v36 = vsel %vm1375_vm0, %v1244_v35, -inf }
 0x234   :  { %2692 = vtanh.f32 %v1006_v31  ;;  %v1360_v41 = vpop.f32.mrf.mxu3  ;;  %1464 = vmax.xlane.f32.xlu0 %v3466_v36 }
 0x235   :  { %2694 = vtanh.f32 %v1007_v32  ;;  %v864_v42 = vpop.f32.mrf.mxu1  ;;  %v1361_v43 = vadd.f32 %v3295_v0, %v1360_v41 }
 0x236   :  { %v865_v57 = vadd.f32 %v3399_v7, %v864_v42 }
 0x237   :  { %v3472_v37 = vsel %vm1375_vm0, %v1361_v43, -inf }
 0x238   :  { %v1245_v44 = vpop.f32.mrf.mxu2  ;;  %1558 = vmax.xlane.f32.xlu2 %v3472_v37 }
 0x239   :  { %v1246_v47 = vadd.f32 %v3295_v0, %v1245_v44 }
 0x23a   :  { %v2693_v49 = vpop.eup %2692 }
 0x23b   :  { %v2695_v48 = vpop.eup %2694  ;;  %v3478_v50 = vsel %vm1375_vm0, %v1246_v47, -inf }
 0x23c   :  { %v1119_v51 = vpack.c.bf16 %v2695_v48, %v2693_v49  ;;  %v1363_v52 = vpop.f32.mrf.mxu3  ;;  %1466 = vmax.xlane.f32.xlu1 %v3478_v50 }
 0x23d   :  { %v866_v53 = vpop.f32.mrf.mxu1  ;;  %v1364_v58 = vadd.f32 %v3295_v0, %v1363_v52 }
 0x23e   :  { %v867_v59 = vadd.f32 %v3399_v7, %v866_v53  ;;  %1287 = vmatmul.bf16.gmra.mxu2 %v1119_v51 }
 0x23f   :  { %v3486_v62 = vsel %vm1375_vm0, %v1364_v58, -inf }
 0x240   :  { %v960_v60 = vpack.c.bf16 %v867_v59, %v865_v57  ;;  %v1248_v1 = vpop.f32.mrf.mxu2  ;;  %1560 = vmax.xlane.f32.xlu0 %v3486_v62 }
 0x241   :  { %v1249_v6 = vadd.f32 %v3295_v0, %v1248_v1 }
 0x242   :  { %v1008_v4 = vunpack.c.l.bf16 %v960_v60  ;;  %v1009_v5 = vunpack.c.h.bf16 %v960_v60 }
 0x243   :  { %v3492_v10 = vsel %vm1375_vm0, %v1249_v6, -inf }
 0x244   :  { %2696 = vtanh.f32 %v1008_v4  ;;  %v1365_v12 = vpop.f32.mrf.mxu3  ;;  %1468 = vmax.xlane.f32.xlu2 %v3492_v10 }
 0x245   :  { %2698 = vtanh.f32 %v1009_v5  ;;  %v869_v13 = vpop.f32.mrf.mxu1  ;;  %v1366_v14 = vadd.f32 %v3295_v0, %v1365_v12 }
 0x246   :  { %v870_v35 = vadd.f32 %v3399_v7, %v869_v13 }
 0x247   :  { %v1441_v16 = vpop.xlane.xlu0 %1440  ;;  %v3498_v20 = vsel %vm1375_vm0, %v1366_v14, -inf }
 0x248   :  { %4269 = vst [vmem:[#allocation2_spill] sm:$0xff] %v3498_v20  ;;  %v3501_v21 = vsub.f32 %v3301_v8, %v1441_v16  ;;  %v1250_v23 = vpop.f32.mrf.mxu2  ;;  %1562 = vmax.xlane.f32.xlu1 %v3498_v20 }
 0x249   :  { %v1251_v26 = vadd.f32 %v3295_v0, %v1250_v23 }
 0x24a   :  { %v2697_v25 = vpop.eup %2696  ;;  %v1632_v28 = vmul.f32 1.442695, %v3501_v21 }
 0x24b   :  { %v2699_v27 = vpop.eup %2698  ;;  %v3508_v30 = vsel %vm1375_vm0, %v1251_v26, -inf }
 0x24c   :  { %v1120_v31 = vpack.c.bf16 %v2699_v27, %v2697_v25  ;;  %2700 = vpow2.f32 %v1632_v28  ;;  %v1368_v32 = vpop.f32.mrf.mxu3  ;;  %1470 = vmax.xlane.f32.xlu0 %v3508_v30 }
 0x24d   :  { %v871_v8 = vpop.f32.mrf.mxu1  ;;  %v1369_v41 = vadd.f32 %v3295_v0, %v1368_v32 }
 0x24e   :  { %v872_v42 = vadd.f32 %v3399_v7, %v871_v8  ;;  %1292 = vmatmul.bf16.gmra.mxu2 %v1120_v31 }
 0x24f   :  { %v1443_v44 = vpop.xlane.xlu0 %1442  ;;  %v3516_v49 = vsel %vm1375_vm0, %v1369_v41, -inf }
 0x250   :  { %v961_v43 = vpack.c.bf16 %v872_v42, %v870_v35  ;;  %4270 = vst [vmem:[#allocation3_spill] sm:$0xff] %v3516_v49  ;;  %v3519_v47 = vsub.f32 %v3309_v22, %v1443_v44  ;;  %v1253_v48 = vpop.f32.mrf.mxu2  ;;  %1564 = vmax.xlane.f32.xlu2 %v3516_v49 }
 0x251   :  { %v1254_v1 = vadd.f32 %v3295_v0, %v1253_v48 }
 0x252   :  { %v1010_v51 = vunpack.c.l.bf16 %v961_v43  ;;  %v1011_v52 = vunpack.c.h.bf16 %v961_v43  ;;  %v2701_v53 = vpop.eup %2700  ;;  %v1634_v57 = vmul.f32 1.442695, %v3519_v47 }
 0x253   :  { %1760 = vadd.xlane.f32.xlu1 %v2701_v53  ;;  %v3540_v26 = vsel %vm1375_vm0, %v1254_v1, -inf }
 0x254   :  { %2702 = vtanh.f32 %v1010_v51  ;;  %v1370_v58 = vpop.f32.mrf.mxu3 }
 0x255   :  { %2704 = vtanh.f32 %v1011_v52  ;;  %v874_v59 = vpop.f32.mrf.mxu1  ;;  %v1371_v60 = vadd.f32 %v3295_v0, %v1370_v58 }
 0x256   :  { %2706 = vpow2.f32 %v1634_v57  ;;  %v875_v28 = vadd.f32 %v3399_v7, %v874_v59 }
 0x257   :  { %v1445_v22 = vpop.xlane.xlu1 %1444  ;;  %v1537_v4 = vpop.xlane.xlu0 %1536  ;;  %v3527_v5 = vsel %vm1375_vm0, %v1371_v60, -inf }
 0x258   :  { %4271 = vst [vmem:[#allocation4_spill] sm:$0xff] %v3527_v5  ;;  %v3530_v6 = vsub.f32 %v3318_v34, %v1445_v22  ;;  %v3533_v12 = vsub.f32 %v3322_v38, %v1537_v4  ;;  %v1255_v13 = vpop.f32.mrf.mxu2  ;;  %1566 = vmax.xlane.f32.xlu0 %v3527_v5 }
 0x259   :  { %v1256_v32 = vadd.f32 %v3295_v0, %v1255_v13 }
 0x25a   :  { %v2703_v14 = vpop.eup %2702  ;;  %v1636_v23 = vmul.f32 1.442695, %v3530_v6  ;;  %v1728_v25 = vmul.f32 1.442695, %v3533_v12 }
 0x25b   :  { %v2705_v16 = vpop.eup %2704  ;;  %1472 = vmax.xlane.f32.xlu1 %v3540_v26  ;;  %v3552_v57 = vsel %vm1375_vm0, %v1256_v32, -inf }
 0x25c   :  { %v2707_v27 = vpop.eup %2706  ;;  %v1121_v34 = vpack.c.bf16 %v2705_v16, %v2703_v14  ;;  %2708 = vpow2.f32 %v1636_v23 }
 0x25d   :  { %1762 = vadd.xlane.f32.xlu2 %v2707_v27  ;;  %v876_v38 = vpop.f32.mrf.mxu1  ;;  %2710 = vpow2.f32 %v1728_v25 }
 0x25e   :  { %v877_v31 = vadd.f32 %v3399_v7, %v876_v38  ;;  %1297 = vmatmul.bf16.gmra.mxu2 %v1121_v34 }
 0x25f   :  { %v1539_v35 = vpop.xlane.xlu1 %1538 }
 0x260   :  { %v962_v8 = vpack.c.bf16 %v877_v31, %v875_v28  ;;  %v3547_v41 = vsub.f32 %v3331_v54, %v1539_v35  ;;  %v1258_v42 = vpop.f32.mrf.mxu2 }
 0x261   :  { %v1259_v59 = vadd.f32 %v3295_v0, %v1258_v42 }
 0x262   :  { %v1012_v43 = vunpack.c.l.bf16 %v962_v8  ;;  %v1013_v44 = vunpack.c.h.bf16 %v962_v8  ;;  %v2709_v48 = vpop.eup %2708  ;;  %v1730_v51 = vmul.f32 1.442695, %v3547_v41 }
 0x263   :  { %v2711_v52 = vpop.eup %2710  ;;  %v1541_v53 = vpop.xlane.xlu2 %1540  ;;  %1764 = vadd.xlane.f32.xlu0 %v2709_v48 }
 0x264   :  { %2712 = vtanh.f32 %v1012_v43  ;;  %v3555_v58 = vsub.f32 %v3340_v2, %v1541_v53  ;;  %1856 = vadd.xlane.f32.xlu1 %v2711_v52  ;;  %v3566_v2 = vsel %vm1375_vm0, %v1259_v59, -inf }
 0x265   :  { %2714 = vtanh.f32 %v1013_v44  ;;  %1474 = vmax.xlane.f32.xlu2 %v3552_v57  ;;  %v879_v54 = vpop.f32.mrf.mxu1 }
 0x266   :  { %2716 = vpow2.f32 %v1730_v51  ;;  %v1732_v60 = vmul.f32 1.442695, %v3555_v58  ;;  %v880_v38 = vadd.f32 %v3399_v7, %v879_v54 }
 0x267   :  { %v1447_v1 = vpop.xlane.xlu1 %1446 }
 0x268   :  { %v3561_v22 = vsub.f32 %v3346_v9, %v1447_v1  ;;  %v1260_v4 = vpop.f32.mrf.mxu2  ;;  %2718 = vpow2.f32 %v1732_v60 }
 0x269   :  { %v1261_v60 = vadd.f32 %v3295_v0, %v1260_v4 }
 0x26a   :  { %v2713_v13 = vpop.eup %2712  ;;  %v1638_v16 = vmul.f32 1.442695, %v3561_v22 }
 0x26b   :  { %v2715_v14 = vpop.eup %2714  ;;  %v1449_v25 = vpop.xlane.xlu2 %1448  ;;  %1476 = vmax.xlane.f32.xlu0 %v3566_v2  ;;  %v3593_v4 = vsel %vm1375_vm0, %v1261_v60, -inf }
 0x26c   :  { %v2717_v23 = vpop.eup %2716  ;;  %v1122_v27 = vpack.c.bf16 %v2715_v14, %v2713_v13  ;;  %2720 = vpow2.f32 %v1638_v16  ;;  %v3570_v34 = vsub.f32 %v3354_v18, %v1449_v25  ;;  %v1543_v32 = vpop.xlane.xlu0 %1542 }
 0x26d   :  { %1858 = vadd.xlane.f32.xlu2 %v2717_v23  ;;  %v881_v9 = vpop.f32.mrf.mxu1  ;;  %v3576_v51 = vsub.f32 %v3358_v19, %v1543_v32 }
 0x26e   :  { %v882_v28 = vadd.f32 %v3399_v7, %v881_v9  ;;  %1302 = vmatmul.bf16.gmra.mxu2 %v1122_v27  ;;  %v1640_v31 = vmul.f32 1.442695, %v3570_v34  ;;  %v2719_v42 = vpop.eup %2718 }
 0x26f   :  { %v1734_v14 = vmul.f32 1.442695, %v3576_v51 }
 0x270   :  { %v963_v8 = vpack.c.bf16 %v882_v28, %v880_v38  ;;  %2722 = vpow2.f32 %v1640_v31  ;;  %v1263_v35 = vpop.f32.mrf.mxu2 }
 0x272   :  { %v1014_v43 = vunpack.c.l.bf16 %v963_v8  ;;  %v1015_v44 = vunpack.c.h.bf16 %v963_v8  ;;  %v2721_v48 = vpop.eup %2720 }
 0x273   :  { %v1451_v18 = vpop.xlane.xlu2 %1450  ;;  %1860 = vadd.xlane.f32.xlu0 %v2719_v42  ;;  %1766 = vadd.xlane.f32.xlu1 %v2721_v48  ;;  %v1545_v54 = vpop.xlane.xlu1 %1544 }
 0x274   :  { %2724 = vtanh.f32 %v1014_v43  ;;  %v3579_v52 = vsub.f32 %v3368_v39, %v1451_v18  ;;  %v3585_v16 = vsub.f32 %v3372_v40, %v1545_v54  ;;  %v1264_v39 = vadd.f32 %v3295_v0, %v1263_v35 }
 0x275   :  { %2726 = vtanh.f32 %v1015_v44  ;;  %v884_v53 = vpop.f32.mrf.mxu1 }
 0x276   :  { %v2723_v59 = vpop.eup %2722  ;;  %v1642_v1 = vmul.f32 1.442695, %v3579_v52  ;;  %v1736_v38 = vmul.f32 1.442695, %v3585_v16  ;;  %v885_v31 = vadd.f32 %v3399_v7, %v884_v53  ;;  %v3602_v35 = vsel %vm1375_vm0, %v1264_v39, -inf }
 0x277   :  { %1768 = vadd.xlane.f32.xlu2 %v2723_v59  ;;  %v1453_v13 = vpop.xlane.xlu0 %1452 }
 0x278   :  { %2728 = vpow2.f32 %v1642_v1  ;;  %v1265_v19 = vpop.f32.mrf.mxu2  ;;  %v3589_v27 = vsub.f32 %v3379_v45, %v1453_v13 }
 0x279   :  { %2730 = vpow2.f32 %v1734_v14  ;;  %v1266_v60 = vadd.f32 %v3295_v0, %v1265_v19 }
 0x27a   :  { %v2725_v23 = vpop.eup %2724  ;;  %v1644_v45 = vmul.f32 1.442695, %v3589_v27  ;;  %2732 = vpow2.f32 %v1736_v38 }
 0x27b   :  { %v2727_v25 = vpop.eup %2726  ;;  %1478 = vmax.xlane.f32.xlu1 %v3593_v4  ;;  %v1547_v40 = vpop.xlane.xlu2 %1546 }
 0x27c   :  { %v1123_v9 = vpack.c.bf16 %v2727_v25, %v2725_v23  ;;  %v3605_v42 = vsub.f32 %v3387_v56, %v1547_v40  ;;  %2734 = vpow2.f32 %v1644_v45 }
 0x27d   :  { %v886_v28 = vpop.f32.mrf.mxu1 }
 0x27e   :  { %v887_v32 = vadd.f32 %v3399_v7, %v886_v28  ;;  %1307 = vmatmul.bf16.gmra.mxu2 %v1123_v9  ;;  %v2729_v8 = vpop.eup %2728  ;;  %v1738_v1 = vmul.f32 1.442695, %v3605_v42 }
 0x27f   :  { %v1455_v44 = vpop.xlane.xlu1 %1454  ;;  %1770 = vadd.xlane.f32.xlu0 %v2729_v8  ;;  %1480 = vmax.xlane.f32.xlu2 %v3602_v35  ;;  %v2731_v59 = vpop.eup %2730 }
 0x280   :  { %v964_v43 = vpack.c.bf16 %v887_v32, %v885_v31  ;;  %v3609_v48 = vsub.f32 %v3393_v3, %v1455_v44  ;;  %v2733_v14 = vpop.eup %2732  ;;  %v3616_v3 = vsel %vm1375_vm0, %v1266_v60, -inf }
 0x281   :  { %v1268_v18 = vpop.f32.mrf.mxu2 }
 0x282   :  { %v1016_v53 = vunpack.c.l.bf16 %v964_v43  ;;  %v1017_v54 = vunpack.c.h.bf16 %v964_v43  ;;  %v1646_v56 = vmul.f32 1.442695, %v3609_v48  ;;  %v2735_v19 = vpop.eup %2734 }
 0x283   :  { %1862 = vadd.xlane.f32.xlu1 %v2731_v59  ;;  %v1549_v23 = vpop.xlane.xlu0 %1548 }
 0x284   :  { %2736 = vtanh.f32 %v1016_v53  ;;  %v3623_v28 = vsub.f32 %v3406_v15, %v1549_v23 }
 0x285   :  { %2738 = vtanh.f32 %v1017_v54  ;;  %v889_v13 = vpop.f32.mrf.mxu1  ;;  %v1269_v54 = vadd.f32 %v3295_v0, %v1268_v18 }
 0x286   :  { %2740 = vpow2.f32 %v1738_v1  ;;  %v890_v43 = vadd.f32 %v3399_v7, %v889_v13  ;;  %v1740_v59 = vmul.f32 1.442695, %v3623_v28 }
 0x287   :  { %v1457_v25 = vpop.xlane.xlu2 %1456  ;;  %1482 = vmax.xlane.f32.xlu0 %v3616_v3  ;;  %1864 = vadd.xlane.f32.xlu2 %v2733_v14  ;;  %2742 = vpow2.f32 %v1646_v56 }
 0x288   :  { %v3620_v39 = vsub.f32 %v3412_v24, %v1457_v25  ;;  %v3636_v25 = vsel %vm1375_vm0, %v1269_v54, -inf }
 0x289   :  { %v1270_v9 = vpop.f32.mrf.mxu2 }
 0x28a   :  { %v2737_v38 = vpop.eup %2736  ;;  %v1648_v32 = vmul.f32 1.442695, %v3620_v39  ;;  %v1271_v23 = vadd.f32 %v3295_v0, %v1270_v9 }
 0x28b   :  { %v2739_v40 = vpop.eup %2738  ;;  %1772 = vadd.xlane.f32.xlu1 %v2735_v19  ;;  %v1551_v44 = vpop.xlane.xlu1 %1550 }
 0x28c   :  { %v1124_v31 = vpack.c.bf16 %v2739_v40, %v2737_v38  ;;  %v2741_v45 = vpop.eup %2740  ;;  %2744 = vpow2.f32 %v1648_v32  ;;  %v3631_v15 = vsub.f32 %v3420_v33, %v1551_v44 }
 0x28d   :  { %v891_v8 = vpop.f32.mrf.mxu1  ;;  %v2743_v24 = vpop.eup %2742  ;;  %2746 = vpow2.f32 %v1740_v59 }
 0x28e   :  { %v892_v53 = vadd.f32 %v3399_v7, %v891_v8  ;;  %1312 = vmatmul.bf16.gmra.mxu2 %v1124_v31  ;;  %v1742_v18 = vmul.f32 1.442695, %v3631_v15  ;;  %v3645_v31 = vsel %vm1375_vm0, %v1271_v23, -inf }
 0x28f   :  { %1866 = vadd.xlane.f32.xlu0 %v2741_v45  ;;  %1774 = vadd.xlane.f32.xlu2 %v2743_v24  ;;  %v1459_v13 = vpop.xlane.xlu0 %1458 }
 0x290   :  { %v965_v60 = vpack.c.bf16 %v892_v53, %v890_v43  ;;  %v3641_v33 = vsub.f32 %v3426_v46, %v1459_v13 }
 0x291   :  { %v1273_v1 = vpop.f32.mrf.mxu2 }
 0x292   :  { %v1018_v56 = vunpack.c.l.bf16 %v965_v60  ;;  %v1019_v14 = vunpack.c.h.bf16 %v965_v60  ;;  %v2745_v40 = vpop.eup %2744  ;;  %v1650_v45 = vmul.f32 1.442695, %v3641_v33  ;;  %v1274_v24 = vadd.f32 %v3295_v0, %v1273_v1 }
 0x293   :  { %1484 = vmax.xlane.f32.xlu1 %v3636_v25  ;;  %v1553_v19 = vpop.xlane.xlu2 %1552  ;;  %v2747_v8 = vpop.eup %2746 }
 0x294   :  { %2748 = vtanh.f32 %v1018_v56  ;;  %v3648_v9 = vsub.f32 %v3434_v55, %v1553_v19  ;;  %v3662_v13 = vsel %vm1375_vm0, %v1274_v24, -inf }
 0x295   :  { %2750 = vtanh.f32 %v1019_v14  ;;  %v894_v38 = vpop.f32.mrf.mxu1 }
 0x296   :  { %2752 = vpow2.f32 %v1742_v18  ;;  %v1744_v54 = vmul.f32 1.442695, %v3648_v9  ;;  %v895_v56 = vadd.f32 %v3399_v7, %v894_v38 }
 0x297   :  { %v1461_v32 = vpop.xlane.xlu1 %1460  ;;  %1776 = vadd.xlane.f32.xlu0 %v2745_v40  ;;  %1486 = vmax.xlane.f32.xlu2 %v3645_v31  ;;  %2754 = vpow2.f32 %v1650_v45 }
 0x298   :  { %v3653_v46 = vsub.f32 %v3440_v63, %v1461_v32  ;;  %2756 = vpow2.f32 %v1744_v54 }
 0x299   :  { %v1275_v43 = vpop.f32.mrf.mxu2 }
 0x29a   :  { %v2749_v44 = vpop.eup %2748  ;;  %v1652_v59 = vmul.f32 1.442695, %v3653_v46 }
 0x29b   :  { %v2751_v53 = vpop.eup %2750  ;;  %1868 = vadd.xlane.f32.xlu1 %v2747_v8  ;;  %v1555_v0 = vpop.xlane.xlu0 %1554 }
 0x29c   :  { %v1125_v55 = vpack.c.bf16 %v2751_v53, %v2749_v44  ;;  %v2753_v63 = vpop.eup %2752  ;;  %2758 = vpow2.f32 %v1652_v59  ;;  %v3669_v8 = vsub.f32 %v3446_v11, %v1555_v0 }
 0x29d   :  { %v896_v60 = vpop.f32.mrf.mxu1  ;;  %v2755_v32 = vpop.eup %2754 }
 0x29e   :  { %v897_v14 = vadd.f32 %v3399_v7, %v896_v60  ;;  %1317 = vmatmul.bf16.gmra.mxu2 %v1125_v55  ;;  %v2757_v53 = vpop.eup %2756  ;;  %v1746_v11 = vmul.f32 1.442695, %v3669_v8 }
 0x29f   :  { %v1463_v23 = vpop.xlane.xlu2 %1462  ;;  %1488 = vmax.xlane.f32.xlu0 %v3662_v13  ;;  %1870 = vadd.xlane.f32.xlu2 %v2753_v63 }
 0x2a0   :  { %v966_v1 = vpack.c.bf16 %v897_v14, %v895_v56  ;;  %v3666_v18 = vsub.f32 %v3452_v17, %v1463_v23  ;;  %v3675_v17 = vld [vmem:[%s4264_s4] ss:$0 sm:$0xff] }
 0x2a1   :  { %v1278_v19 = vpop.f32.mrf.mxu2  ;;  %v1276_v54 = vadd.f32 %v3675_v17, %v1275_v43 }
 0x2a2   :  { %v1020_v38 = vunpack.c.l.bf16 %v966_v1  ;;  %v1021_v40 = vunpack.c.h.bf16 %v966_v1  ;;  %v1654_v45 = vmul.f32 1.442695, %v3666_v18  ;;  %v2759_v24 = vpop.eup %2758  ;;  %v1279_v63 = vadd.f32 %v3675_v17, %v1278_v19 }
 0x2a3   :  { %1778 = vadd.xlane.f32.xlu1 %v2755_v32  ;;  %v3678_v55 = vpop.xlane.xlu1 %1556  ;;  %v3687_v1 = vsel %vm1375_vm0, %v1276_v54, -inf }
 0x2a4   :  { %2760 = vtanh.f32 %v1020_v38 }
 0x2a5   :  { %2762 = vtanh.f32 %v1021_v40  ;;  %v899_v44 = vpop.f32.mrf.mxu1 }
 0x2a6   :  { %2764 = vpow2.f32 %v1654_v45  ;;  %v900_v38 = vadd.f32 %v3399_v7, %v899_v44 }
 0x2a7   :  { %1872 = vadd.xlane.f32.xlu0 %v2757_v53  ;;  %1780 = vadd.xlane.f32.xlu2 %v2759_v24  ;;  %v1465_v59 = vpop.xlane.xlu0 %1464  ;;  %2766 = vpow2.f32 %v1746_v11 }
 0x2a8   :  { %v3683_v0 = vsub.f32 %v3466_v36, %v1465_v59  ;;  %v3695_v36 = vsel %vm1375_vm0, %v1279_v63, -inf }
 0x2a9   :  { %v1280_v60 = vpop.f32.mrf.mxu2 }
 0x2aa   :  { %v2761_v56 = vpop.eup %2760  ;;  %v1656_v19 = vmul.f32 1.442695, %v3683_v0 }
 0x2ab   :  { %v2763_v14 = vpop.eup %2762  ;;  %1490 = vmax.xlane.f32.xlu1 %v3687_v1  ;;  %v3697_v45 = vpop.xlane.xlu2 %1558 }
 0x2ac   :  { %v1126_v43 = vpack.c.bf16 %v2763_v14, %v2761_v56  ;;  %v2765_v32 = vpop.eup %2764  ;;  %2768 = vpow2.f32 %v1656_v19  ;;  %v1281_v56 = vadd.f32 %v3675_v17, %v1280_v60 }
 0x2ad   :  { %v901_v23 = vpop.f32.mrf.mxu1  ;;  %v2767_v11 = vpop.eup %2766 }
 0x2ae   :  { %v902_v40 = vadd.f32 %v3399_v7, %v901_v23  ;;  %1322 = vmatmul.bf16.gmra.mxu2 %v1126_v43  ;;  %v3707_v63 = vsel %vm1375_vm0, %v1281_v56, -inf }
 0x2af   :  { %v1467_v24 = vpop.xlane.xlu1 %1466  ;;  %1782 = vadd.xlane.f32.xlu0 %v2765_v32  ;;  %1492 = vmax.xlane.f32.xlu2 %v3695_v36 }
 0x2b0   :  { %v967_v53 = vpack.c.bf16 %v902_v40, %v900_v38  ;;  %v3701_v54 = vsub.f32 %v3478_v50, %v1467_v24 }
 0x2b1   :  { %v1283_v44 = vpop.f32.mrf.mxu2 }
 0x2b2   :  { %v1022_v7 = vunpack.c.l.bf16 %v967_v53  ;;  %v1023_v59 = vunpack.c.h.bf16 %v967_v53  ;;  %v1658_v14 = vmul.f32 1.442695, %v3701_v54  ;;  %v2769_v23 = vpop.eup %2768 }
 0x2b3   :  { %1874 = vadd.xlane.f32.xlu1 %v2767_v11  ;;  %v3709_v43 = vpop.xlane.xlu0 %1560 }
 0x2b4   :  { %2770 = vtanh.f32 %v1022_v7  ;;  %v1284_v7 = vadd.f32 %v3675_v17, %v1283_v44 }
 0x2b5   :  { %2772 = vtanh.f32 %v1023_v59 }
 0x2b6   :  { %2774 = vpow2.f32 %v1658_v14 }
 0x2b7   :  { %v1469_v50 = vpop.xlane.xlu2 %1468  ;;  %1494 = vmax.xlane.f32.xlu0 %v3707_v63 }
 0x2b8   :  { %v3713_v38 = vsub.f32 %v3492_v10, %v1469_v50 }
 0x2b9   :  { %v1285_v60 = vpop.f32.mrf.mxu2 }
 0x2ba   :  { %v2771_v40 = vpop.eup %2770  ;;  %v1660_v19 = vmul.f32 1.442695, %v3713_v38  ;;  %v1286_v11 = vadd.f32 %v3675_v17, %v1285_v60 }
 0x2bb   :  { %v2773_v32 = vpop.eup %2772  ;;  %1784 = vadd.xlane.f32.xlu1 %v2769_v23  ;;  %v3717_v59 = vpop.xlane.xlu1 %1562  ;;  %v3726_v23 = vsel %vm1375_vm0, %v1284_v7, -inf }
 0x2bc   :  { %v2775_v53 = vpop.eup %2774  ;;  %v1127_v24 = vpack.c.bf16 %v2773_v32, %v2771_v40  ;;  %2776 = vpow2.f32 %v1660_v19  ;;  %4272 = vst [vmem:[#allocation5_spill] sm:$0xff] %v3717_v59  ;;  %v3730_v44 = vsel %vm1375_vm0, %v1286_v11, -inf }
 0x2bd   :  { %1786 = vadd.xlane.f32.xlu2 %v2775_v53 }
 0x2be   :  { %1327 = vmatmul.bf16.gmra.mxu2 %v1127_v24 }
 0x2bf   :  { %v1471_v56 = vpop.xlane.xlu0 %1470 }
 0x2c0   :  { %v3721_v10 = vsub.f32 %v3508_v30, %v1471_v56 }
 0x2c1   :  { %v1288_v14 = vpop.f32.mrf.mxu2 }
 0x2c2   :  { %v2777_v50 = vpop.eup %2776  ;;  %v1662_v49 = vmul.f32 1.442695, %v3721_v10  ;;  %v1289_v30 = vadd.f32 %v3675_v17, %v1288_v14 }
 0x2c3   :  { %1788 = vadd.xlane.f32.xlu0 %v2777_v50  ;;  %1496 = vmax.xlane.f32.xlu1 %v3726_v23  ;;  %v3735_v40 = vpop.xlane.xlu2 %1564 }
 0x2c4   :  { %2778 = vpow2.f32 %v1662_v49  ;;  %4273 = vst [vmem:[#allocation6_spill] sm:$0xff] %v3735_v40  ;;  %v3739_v53 = vsel %vm1375_vm0, %v1289_v30, -inf }
 0x2c5   :  { %1498 = vmax.xlane.f32.xlu2 %v3730_v44 }
 0x2c6   :  { %v1761_v60 = vpop.xlane.xlu1 %1760 }
 0x2c7   :  { %2780 = vlog2.f32 %v1761_v60 }
 0x2c9   :  { %v1290_v32 = vpop.f32.mrf.mxu2 }
 0x2ca   :  { %v2779_v19 = vpop.eup %2778  ;;  %v1291_v49 = vadd.f32 %v3675_v17, %v1290_v32 }
 0x2cb   :  { %1500 = vmax.xlane.f32.xlu0 %v3739_v53  ;;  %1790 = vadd.xlane.f32.xlu1 %v2779_v19  ;;  %v3743_v11 = vpop.xlane.xlu0 %1566 }
 0x2cc   :  { %v3755_v32 = vsel %vm1375_vm0, %v1291_v49, -inf }
 0x2cd   :  { %v2781_v24 = vpop.eup %2780 }
 0x2ce   :  { %v1889_v7 = vmul.f32 0.6931472, %v2781_v24  ;;  %v1473_v56 = vpop.xlane.xlu1 %1472 }
 0x2cf   :  { %v3746_v14 = vsub.f32 %v3540_v26, %v1473_v56 }
 0x2d0   :  { %v1763_v50 = vpop.xlane.xlu2 %1762  ;;  %v2016_v60 = vsub.f32 %v3501_v21, %v1889_v7 }
 0x2d1   :  { %v1293_v40 = vpop.f32.mrf.mxu2  ;;  %v1664_v30 = vmul.f32 1.442695, %v3746_v14  ;;  %2782 = vlog2.f32 %v1763_v50 }
 0x2d2   :  { %2080 = vst [vmem:[%s4265_s5] sm:$0xff] %v2016_v60 }
 0x2d3   :  { %2784 = vpow2.f32 %v1664_v30  ;;  %1502 = vmax.xlane.f32.xlu1 %v3755_v32 }
 0x2d6   :  { %v1765_v26 = vpop.xlane.xlu0 %1764 }
 0x2d7   :  { %v2783_v19 = vpop.eup %2782  ;;  %v1857_v56 = vpop.xlane.xlu1 %1856  ;;  %2786 = vlog2.f32 %v1765_v26  ;;  %v1294_v26 = vadd.f32 %v3675_v17, %v1293_v40 }
 0x2d8   :  { %v1475_v24 = vpop.xlane.xlu2 %1474  ;;  %v1891_v21 = vmul.f32 0.6931472, %v2783_v19  ;;  %2788 = vlog2.f32 %v1857_v56 }
 0x2d9   :  { %v3759_v7 = vsub.f32 %v3552_v57, %v1475_v24  ;;  %v1295_v50 = vpop.f32.mrf.mxu2  ;;  %v2785_v20 = vpop.eup %2784 }
 0x2da   :  { %v2017_v60 = vsub.f32 %v3519_v47, %v1891_v21  ;;  %1792 = vadd.xlane.f32.xlu2 %v2785_v20 }
 0x2db   :  { %v1666_v49 = vmul.f32 1.442695, %v3759_v7 }
 0x2dc   :  { %2081 = vst [vmem:[%s4265_s5 + $0x8] sm:$0xff] %v2017_v60 }
 0x2dd   :  { %2790 = vpow2.f32 %v1666_v49  ;;  %v2787_v30 = vpop.eup %2786  ;;  %v3775_v49 = vsel %vm1375_vm0, %v1294_v26, -inf }
 0x2de   :  { %v2789_v19 = vpop.eup %2788  ;;  %v1893_v59 = vmul.f32 0.6931472, %v2787_v30  ;;  %v1477_v57 = vpop.xlane.xlu0 %1476 }
 0x2df   :  { %v1985_v24 = vmul.f32 0.6931472, %v2789_v19  ;;  %v3768_v5 = vsub.f32 %v3566_v2, %v1477_v57 }
 0x2e0   :  { %v1859_v56 = vpop.xlane.xlu2 %1858  ;;  %v2018_v47 = vsub.f32 %v3530_v6, %v1893_v59 }
 0x2e1   :  { %2792 = vlog2.f32 %v1859_v56  ;;  %v1298_v20 = vpop.f32.mrf.mxu2  ;;  %v2064_v21 = vsub.f32 %v3533_v12, %v1985_v24  ;;  %v1668_v60 = vmul.f32 1.442695, %v3768_v5  ;;  %v1296_v12 = vadd.f32 %v3675_v17, %v1295_v50 }
 0x2e2   :  { %2082 = vst [vmem:[%s4265_s5 + $0x10] sm:$0xff] %v2018_v47  ;;  %1504 = vmax.xlane.f32.xlu2 %v3775_v49  ;;  %v1299_v47 = vadd.f32 %v3675_v17, %v1298_v20 }
 0x2e3   :  { %v2791_v40 = vpop.eup %2790  ;;  %2128 = vst [vmem:[%s4265_s5 + $0x180] sm:$0xff] %v2064_v21  ;;  %2794 = vpow2.f32 %v1668_v60  ;;  %v3788_v24 = vsel %vm1375_vm0, %v1296_v12, -inf }
 0x2e4   :  { %1794 = vadd.xlane.f32.xlu0 %v2791_v40 }
 0x2e6   :  { %v1767_v2 = vpop.xlane.xlu1 %1766  ;;  %v1861_v59 = vpop.xlane.xlu0 %1860 }
 0x2e7   :  { %v2793_v6 = vpop.eup %2792  ;;  %2796 = vlog2.f32 %v1767_v2 }
 0x2e8   :  { %v1987_v30 = vmul.f32 0.6931472, %v2793_v6  ;;  %2798 = vlog2.f32 %v1861_v59 }
 0x2e9   :  { %v1300_v26 = vpop.f32.mrf.mxu2  ;;  %v2795_v19 = vpop.eup %2794 }
 0x2ea   :  { %v2065_v57 = vsub.f32 %v3547_v41, %v1987_v30  ;;  %v1769_v56 = vpop.xlane.xlu2 %1768  ;;  %1796 = vadd.xlane.f32.xlu1 %v2795_v19 }
 0x2eb   :  { %2800 = vlog2.f32 %v1769_v56 }
 0x2ec   :  { %2129 = vst [vmem:[%s4265_s5 + $0x188] sm:$0xff] %v2065_v57  ;;  %1506 = vmax.xlane.f32.xlu0 %v3788_v24  ;;  %v3803_v57 = vsel %vm1375_vm0, %v1299_v47, -inf }
 0x2ed   :  { %v2797_v50 = vpop.eup %2796 }
 0x2ee   :  { %v2799_v21 = vpop.eup %2798  ;;  %v1895_v60 = vmul.f32 0.6931472, %v2797_v50  ;;  %v1479_v40 = vpop.xlane.xlu1 %1478 }
 0x2ef   :  { %v1989_v41 = vmul.f32 0.6931472, %v2799_v21  ;;  %v3796_v6 = vsub.f32 %v3593_v4, %v1479_v40 }
 0x2f0   :  { %v2019_v12 = vsub.f32 %v3561_v22, %v1895_v60 }
 0x2f1   :  { %v1303_v2 = vpop.f32.mrf.mxu2  ;;  %v2801_v59 = vpop.eup %2800  ;;  %v2066_v30 = vsub.f32 %v3555_v58, %v1989_v41  ;;  %v1670_v19 = vmul.f32 1.442695, %v3796_v6 }
 0x2f2   :  { %2083 = vst [vmem:[%s4265_s5 + $0x18] sm:$0xff] %v2019_v12  ;;  %v1897_v20 = vmul.f32 0.6931472, %v2801_v59  ;;  %v1481_v56 = vpop.xlane.xlu2 %1480  ;;  %1508 = vmax.xlane.f32.xlu1 %v3803_v57  ;;  %v1771_v4 = vpop.xlane.xlu0 %1770 }
 0x2f3   :  { %2130 = vst [vmem:[%s4265_s5 + $0x190] sm:$0xff] %v2066_v30  ;;  %2802 = vpow2.f32 %v1670_v19  ;;  %v3813_v58 = vsub.f32 %v3602_v35, %v1481_v56  ;;  %v1301_v30 = vadd.f32 %v3675_v17, %v1300_v26 }
 0x2f4   :  { %v2020_v22 = vsub.f32 %v3570_v34, %v1897_v20  ;;  %2804 = vlog2.f32 %v1771_v4 }
 0x2f5   :  { %v1672_v50 = vmul.f32 1.442695, %v3813_v58 }
 0x2f6   :  { %2084 = vst [vmem:[%s4265_s5 + $0x20] sm:$0xff] %v2020_v22  ;;  %v1863_v47 = vpop.xlane.xlu1 %1862 }
 0x2f7   :  { %2806 = vpow2.f32 %v1672_v50 }
 0x2f8   :  { %2808 = vlog2.f32 %v1863_v47  ;;  %v1304_v47 = vadd.f32 %v3675_v17, %v1303_v2 }
 0x2f9   :  { %v1305_v21 = vpop.f32.mrf.mxu2  ;;  %v2803_v60 = vpop.eup %2802 }
 0x2fa   :  { %v2805_v40 = vpop.eup %2804  ;;  %v1865_v41 = vpop.xlane.xlu2 %1864  ;;  %1798 = vadd.xlane.f32.xlu2 %v2803_v60 }
 0x2fb   :  { %v1483_v12 = vpop.xlane.xlu0 %1482  ;;  %v1899_v35 = vmul.f32 0.6931472, %v2805_v40  ;;  %2810 = vlog2.f32 %v1865_v41 }
 0x2fc   :  { %v3821_v34 = vsub.f32 %v3616_v3, %v1483_v12 }
 0x2fd   :  { %v2807_v59 = vpop.eup %2806  ;;  %v2021_v19 = vsub.f32 %v3579_v52, %v1899_v35  ;;  %v3833_v52 = vsel %vm1375_vm0, %v1301_v30, -inf }
 0x2fe   :  { %v1674_v20 = vmul.f32 1.442695, %v3821_v34  ;;  %v2809_v56 = vpop.eup %2808  ;;  %1800 = vadd.xlane.f32.xlu0 %v2807_v59  ;;  %v1773_v4 = vpop.xlane.xlu1 %1772 }
 0x2ff   :  { %2085 = vst [vmem:[%s4265_s5 + $0x28] sm:$0xff] %v2021_v19  ;;  %v1991_v22 = vmul.f32 0.6931472, %v2809_v56  ;;  %v1306_v56 = vadd.f32 %v3675_v17, %v1305_v21 }
 0x300   :  { %2812 = vpow2.f32 %v1674_v20 }
 0x301   :  { %2814 = vlog2.f32 %v1773_v4  ;;  %v1308_v50 = vpop.f32.mrf.mxu2  ;;  %v2811_v3 = vpop.eup %2810  ;;  %v2067_v26 = vsub.f32 %v3576_v51, %v1991_v22  ;;  %v3842_v51 = vsel %vm1375_vm0, %v1304_v47, -inf }
 0x302   :  { %v1993_v60 = vmul.f32 0.6931472, %v2811_v3  ;;  %v1775_v40 = vpop.xlane.xlu2 %1774  ;;  %1510 = vmax.xlane.f32.xlu2 %v3833_v52 }
 0x303   :  { %v1867_v41 = vpop.xlane.xlu0 %1866  ;;  %2131 = vst [vmem:[%s4265_s5 + $0x198] sm:$0xff] %v2067_v26  ;;  %2816 = vlog2.f32 %v1775_v40 }
 0x304   :  { %v2068_v12 = vsub.f32 %v3585_v16, %v1993_v60  ;;  %2818 = vlog2.f32 %v1867_v41 }
 0x306   :  { %v2813_v2 = vpop.eup %2812  ;;  %2132 = vst [vmem:[%s4265_s5 + $0x1a0] sm:$0xff] %v2068_v12  ;;  %1512 = vmax.xlane.f32.xlu0 %v3842_v51  ;;  %v1485_v59 = vpop.xlane.xlu1 %1484  ;;  %v3865_v12 = vsel %vm1375_vm0, %v1306_v56, -inf }
 0x307   :  { %v2815_v35 = vpop.eup %2814  ;;  %1802 = vadd.xlane.f32.xlu1 %v2813_v2  ;;  %v3849_v19 = vsub.f32 %v3636_v25, %v1485_v59 }
 0x308   :  { %v1901_v30 = vmul.f32 0.6931472, %v2815_v35 }
 0x309   :  { %v1310_v16 = vpop.f32.mrf.mxu2  ;;  %v2817_v20 = vpop.eup %2816  ;;  %v1676_v22 = vmul.f32 1.442695, %v3849_v19 }
 0x30a   :  { %v2022_v4 = vsub.f32 %v3589_v27, %v1901_v30  ;;  %v2819_v3 = vpop.eup %2818  ;;  %v1903_v47 = vmul.f32 0.6931472, %v2817_v20  ;;  %v1487_v26 = vpop.xlane.xlu2 %1486 }
 0x30b   :  { %v1777_v60 = vpop.xlane.xlu0 %1776  ;;  %v1995_v40 = vmul.f32 0.6931472, %v2819_v3  ;;  %2820 = vpow2.f32 %v1676_v22  ;;  %v3858_v25 = vsub.f32 %v3645_v31, %v1487_v26 }
 0x30c   :  { %2086 = vst [vmem:[%s4265_s5 + $0x30] sm:$0xff] %v2022_v4  ;;  %v2023_v41 = vsub.f32 %v3609_v48, %v1903_v47  ;;  %2822 = vlog2.f32 %v1777_v60  ;;  %v1309_v4 = vadd.f32 %v3675_v17, %v1308_v50 }
 0x30d   :  { %v2069_v27 = vsub.f32 %v3605_v42, %v1995_v40  ;;  %v1678_v21 = vmul.f32 1.442695, %v3858_v25 }
 0x30e   :  { %2087 = vst [vmem:[%s4265_s5 + $0x38] sm:$0xff] %v2023_v41  ;;  %v1869_v2 = vpop.xlane.xlu1 %1868  ;;  %v1311_v41 = vadd.f32 %v3675_v17, %v1310_v16 }
 0x30f   :  { %1514 = vmax.xlane.f32.xlu1 %v3865_v12  ;;  %2133 = vst [vmem:[%s4265_s5 + $0x1a8] sm:$0xff] %v2069_v27  ;;  %2824 = vpow2.f32 %v1678_v21 }
 0x310   :  { %2826 = vlog2.f32 %v1869_v2 }
 0x311   :  { %v1313_v42 = vpop.f32.mrf.mxu2  ;;  %v2821_v48 = vpop.eup %2820 }
 0x312   :  { %v2823_v31 = vpop.eup %2822  ;;  %v1871_v35 = vpop.xlane.xlu2 %1870  ;;  %1804 = vadd.xlane.f32.xlu2 %v2821_v48 }
 0x313   :  { %v1489_v59 = vpop.xlane.xlu0 %1488  ;;  %v1905_v30 = vmul.f32 0.6931472, %v2823_v31  ;;  %2828 = vlog2.f32 %v1871_v35 }
 0x314   :  { %v3875_v20 = vsub.f32 %v3662_v13, %v1489_v59 }
 0x315   :  { %v2825_v56 = vpop.eup %2824  ;;  %v2024_v22 = vsub.f32 %v3620_v39, %v1905_v30  ;;  %v3887_v39 = vsel %vm1375_vm0, %v1309_v4, -inf  ;;  %v1314_v4 = vadd.f32 %v3675_v17, %v1313_v42 }
 0x316   :  { %v1680_v3 = vmul.f32 1.442695, %v3875_v20  ;;  %v2827_v47 = vpop.eup %2826  ;;  %1806 = vadd.xlane.f32.xlu0 %v2825_v56  ;;  %v1779_v26 = vpop.xlane.xlu1 %1778 }
 0x317   :  { %2088 = vst [vmem:[%s4265_s5 + $0x40] sm:$0xff] %v2024_v22  ;;  %v1997_v60 = vmul.f32 0.6931472, %v2827_v47 }
 0x318   :  { %2830 = vpow2.f32 %v1680_v3 }
 0x319   :  { %2832 = vlog2.f32 %v1779_v26  ;;  %v1315_v40 = vpop.f32.mrf.mxu2  ;;  %v2829_v13 = vpop.eup %2828  ;;  %v2070_v50 = vsub.f32 %v3623_v28, %v1997_v60  ;;  %v3896_v28 = vsel %vm1375_vm0, %v1311_v41, -inf }
 0x31a   :  { %v1999_v27 = vmul.f32 0.6931472, %v2829_v13  ;;  %v1781_v21 = vpop.xlane.xlu2 %1780  ;;  %1516 = vmax.xlane.f32.xlu2 %v3887_v39 }
 0x31b   :  { %v1873_v2 = vpop.xlane.xlu0 %1872  ;;  %2134 = vst [vmem:[%s4265_s5 + $0x1b0] sm:$0xff] %v2070_v50  ;;  %2834 = vlog2.f32 %v1781_v21 }
 0x31c   :  { %v2071_v48 = vsub.f32 %v3631_v15, %v1999_v27  ;;  %2836 = vlog2.f32 %v1873_v2  ;;  %v3919_v27 = vsel %vm1375_vm0, %v1314_v4, -inf }
 0x31e   :  { %v2831_v16 = vpop.eup %2830  ;;  %2135 = vst [vmem:[%s4265_s5 + $0x1b8] sm:$0xff] %v2071_v48  ;;  %1518 = vmax.xlane.f32.xlu0 %v3896_v28  ;;  %v1491_v35 = vpop.xlane.xlu1 %1490 }
 0x31f   :  { %v2833_v31 = vpop.eup %2832  ;;  %1808 = vadd.xlane.f32.xlu1 %v2831_v16  ;;  %v3903_v30 = vsub.f32 %v3687_v1, %v1491_v35  ;;  %v1316_v35 = vadd.f32 %v3675_v17, %v1315_v40 }
 0x320   :  { %v1907_v59 = vmul.f32 0.6931472, %v2833_v31 }
 0x321   :  { %v1318_v15 = vpop.f32.mrf.mxu2  ;;  %v2835_v56 = vpop.eup %2834  ;;  %v1682_v3 = vmul.f32 1.442695, %v3903_v30 }
 0x322   :  { %v2025_v22 = vsub.f32 %v3641_v33, %v1907_v59  ;;  %v2837_v47 = vpop.eup %2836  ;;  %v1909_v26 = vmul.f32 0.6931472, %v2835_v56  ;;  %v1493_v60 = vpop.xlane.xlu2 %1492 }
 0x323   :  { %v1783_v13 = vpop.xlane.xlu0 %1782  ;;  %v2001_v41 = vmul.f32 0.6931472, %v2837_v47  ;;  %2838 = vpow2.f32 %v1682_v3  ;;  %v3912_v1 = vsub.f32 %v3695_v36, %v1493_v60 }
 0x324   :  { %2089 = vst [vmem:[%s4265_s5 + $0x48] sm:$0xff] %v2025_v22  ;;  %v2026_v50 = vsub.f32 %v3653_v46, %v1909_v26  ;;  %2840 = vlog2.f32 %v1783_v13 }
 0x325   :  { %v2072_v33 = vsub.f32 %v3648_v9, %v2001_v41  ;;  %v1684_v42 = vmul.f32 1.442695, %v3912_v1 }
 0x326   :  { %2090 = vst [vmem:[%s4265_s5 + $0x50] sm:$0xff] %v2026_v50  ;;  %v1875_v21 = vpop.xlane.xlu1 %1874 }
 0x327   :  { %1520 = vmax.xlane.f32.xlu1 %v3919_v27  ;;  %2136 = vst [vmem:[%s4265_s5 + $0x1c0] sm:$0xff] %v2072_v33  ;;  %2842 = vpow2.f32 %v1684_v42 }
 0x328   :  { %2844 = vlog2.f32 %v1875_v21 }
 0x329   :  { %v2839_v9 = vpop.eup %2838  ;;  %v1320_v46 = vpop.f32.mrf.mxu2 }
 0x32a   :  { %v2841_v36 = vpop.eup %2840  ;;  %1810 = vadd.xlane.f32.xlu2 %v2839_v9 }
 0x32b   :  { %v1495_v2 = vpop.xlane.xlu0 %1494  ;;  %v1911_v48 = vmul.f32 0.6931472, %v2841_v36 }
 0x32c   :  { %v3929_v16 = vsub.f32 %v3707_v63, %v1495_v2  ;;  %v1319_v63 = vadd.f32 %v3675_v17, %v1318_v15  ;;  %v1321_v2 = vadd.f32 %v3675_v17, %v1320_v46 }
 0x32d   :  { %v2843_v31 = vpop.eup %2842  ;;  %v2027_v59 = vsub.f32 %v3666_v18, %v1911_v48  ;;  %v3941_v18 = vsel %vm1375_vm0, %v1316_v35, -inf }
 0x32e   :  { %v1686_v56 = vmul.f32 1.442695, %v3929_v16  ;;  %v2845_v4 = vpop.eup %2844  ;;  %1812 = vadd.xlane.f32.xlu0 %v2843_v31  ;;  %v1785_v22 = vpop.xlane.xlu1 %1784  ;;  %v3949_v13 = vsel %vm1375_vm0, %v1319_v63, -inf }
 0x32f   :  { %2091 = vst [vmem:[%s4265_s5 + $0x58] sm:$0xff] %v2027_v59  ;;  %v2003_v3 = vmul.f32 0.6931472, %v2845_v4 }
 0x330   :  { %2846 = vpow2.f32 %v1686_v56  ;;  %v1787_v47 = vpop.xlane.xlu2 %1786 }
 0x331   :  { %2848 = vlog2.f32 %v1787_v47  ;;  %v2073_v26 = vsub.f32 %v3669_v8, %v2003_v3  ;;  %v1323_v40 = vpop.f32.mrf.mxu2 }
 0x332   :  { %2850 = vlog2.f32 %v1785_v22  ;;  %1522 = vmax.xlane.f32.xlu2 %v3941_v18 }
 0x333   :  { %2137 = vst [vmem:[%s4265_s5 + $0x1c8] sm:$0xff] %v2073_v26  ;;  %v3984_v26 = vsub.f32 %v3472_v37, %v3697_v45 }
 0x336   :  { %v2847_v60 = vpop.eup %2846  ;;  %1524 = vmax.xlane.f32.xlu0 %v3949_v13  ;;  %v1497_v8 = vpop.xlane.xlu1 %1496 }
 0x337   :  { %v2849_v15 = vpop.eup %2848  ;;  %1814 = vadd.xlane.f32.xlu1 %v2847_v60  ;;  %v1789_v41 = vpop.xlane.xlu0 %1788  ;;  %v3953_v21 = vsub.f32 %v3726_v23, %v1497_v8 }
 0x338   :  { %v2851_v50 = vpop.eup %2850  ;;  %v1915_v33 = vmul.f32 0.6931472, %v2849_v15  ;;  %v1499_v42 = vpop.xlane.xlu2 %1498  ;;  %2852 = vlog2.f32 %v1789_v41 }
 0x339   :  { %v1913_v9 = vmul.f32 0.6931472, %v2851_v50  ;;  %v3956_v36 = vsub.f32 %v3730_v44, %v1499_v42  ;;  %v1688_v31 = vmul.f32 1.442695, %v3953_v21  ;;  %v1325_v44 = vpop.f32.mrf.mxu2  ;;  %v1750_v50 = vmul.f32 1.442695, %v3984_v26 }
 0x33a   :  { %v2029_v48 = vsub.f32 %v3701_v54, %v1915_v33  ;;  %v3971_v54 = vsel %vm1375_vm0, %v1321_v2, -inf }
 0x33b   :  { %v2028_v35 = vsub.f32 %v3683_v0, %v1913_v9  ;;  %v1690_v59 = vmul.f32 1.442695, %v3956_v36  ;;  %2854 = vpow2.f32 %v1688_v31 }
 0x33c   :  { %2093 = vst [vmem:[%s4265_s5 + $0x68] sm:$0xff] %v2029_v48 }
 0x33d   :  { %2092 = vst [vmem:[%s4265_s5 + $0x60] sm:$0xff] %v2028_v35  ;;  %2856 = vpow2.f32 %v1690_v59 }
 0x33e   :  { %v2853_v23 = vpop.eup %2852  ;;  %v1791_v0 = vpop.xlane.xlu1 %1790 }
 0x33f   :  { %v1917_v46 = vmul.f32 0.6931472, %v2853_v23  ;;  %1526 = vmax.xlane.f32.xlu1 %v3971_v54  ;;  %v1501_v56 = vpop.xlane.xlu0 %1500  ;;  %2858 = vlog2.f32 %v1791_v0 }
 0x340   :  { %v3975_v4 = vsub.f32 %v3739_v53, %v1501_v56  ;;  %v1324_v53 = vadd.f32 %v3675_v17, %v1323_v40 }
 0x341   :  { %v2030_v22 = vsub.f32 %v3713_v38, %v1917_v46  ;;  %v2855_v3 = vpop.eup %2854  ;;  %v1326_v38 = vadd.f32 %v3675_v17, %v1325_v44  ;;  %v1328_v42 = vpop.f32.mrf.mxu2 }
 0x342   :  { %v1692_v47 = vmul.f32 1.442695, %v3975_v4  ;;  %1816 = vadd.xlane.f32.xlu2 %v2855_v3  ;;  %v3996_v37 = vsel %vm1375_vm0, %v1324_v53, -inf }
 0x343   :  { %v2857_v63 = vpop.eup %2856  ;;  %2094 = vst [vmem:[%s4265_s5 + $0x70] sm:$0xff] %v2030_v22  ;;  %v4003_v45 = vsel %vm1375_vm0, %v1326_v38, -inf }
 0x344   :  { %2860 = vpow2.f32 %v1692_v47  ;;  %1818 = vadd.xlane.f32.xlu0 %v2857_v63 }
 0x345   :  { %v2859_v60 = vpop.eup %2858 }
 0x346   :  { %v1919_v15 = vmul.f32 0.6931472, %v2859_v60  ;;  %v1503_v8 = vpop.xlane.xlu1 %1502 }
 0x347   :  { %v3989_v41 = vsub.f32 %v3755_v32, %v1503_v8  ;;  %v1329_v32 = vadd.f32 %v3675_v17, %v1328_v42 }
 0x348   :  { %v2031_v33 = vsub.f32 %v3721_v10, %v1919_v15  ;;  %v4008_v10 = vsub.f32 %v3486_v62, %v3709_v43  ;;  %v4020_v62 = vsub.f32 %v3460_v29, %v3678_v55 }
 0x349   :  { %v1694_v2 = vmul.f32 1.442695, %v3989_v41  ;;  %v4015_v35 = vsel %vm1375_vm0, %v1329_v32, -inf  ;;  %v1330_v23 = vpop.f32.mrf.mxu2 }
 0x34a   :  { %v2861_v9 = vpop.eup %2860  ;;  %2095 = vst [vmem:[%s4265_s5 + $0x78] sm:$0xff] %v2031_v33  ;;  %1528 = vmax.xlane.f32.xlu2 %v3996_v37  ;;  %v1752_v48 = vmul.f32 1.442695, %v4008_v10  ;;  %v1331_v44 = vadd.f32 %v3675_v17, %v1330_v23  ;;  %v1748_v3 = vmul.f32 1.442695, %v4020_v62 }
 0x34b   :  { %1820 = vadd.xlane.f32.xlu1 %v2861_v9  ;;  %2862 = vpow2.f32 %v1694_v2 }
 0x34c   :  { %1530 = vmax.xlane.f32.xlu0 %v4003_v45  ;;  %2864 = vpow2.f32 %v1750_v50  ;;  %v4034_v17 = vsel %vm1375_vm0, %v1331_v44, -inf }
 0x34d   :  { %v1793_v40 = vpop.xlane.xlu2 %1792 }
 0x34e   :  { %2866 = vlog2.f32 %v1793_v40 }
 0x34f   :  { %2868 = vpow2.f32 %v1752_v48 }
 0x351   :  { %v2863_v31 = vpop.eup %2862 }
 0x352   :  { %v2865_v59 = vpop.eup %2864  ;;  %1822 = vadd.xlane.f32.xlu2 %v2863_v31 }
 0x353   :  { %1532 = vmax.xlane.f32.xlu1 %v4015_v35 }
 0x354   :  { %1878 = vadd.xlane.f32.xlu0 %v2865_v59  ;;  %v2867_v43 = vpop.eup %2866 }
 0x355   :  { %v1921_v46 = vmul.f32 0.6931472, %v2867_v43  ;;  %v1505_v0 = vpop.xlane.xlu2 %1504  ;;  %v2869_v29 = vpop.eup %2868 }
 0x356   :  { %v4024_v56 = vsub.f32 %v3775_v49, %v1505_v0 }
 0x357   :  { %v1795_v22 = vpop.xlane.xlu0 %1794  ;;  %v2032_v47 = vsub.f32 %v3746_v14, %v1921_v46 }
 0x358   :  { %2870 = vlog2.f32 %v1795_v22  ;;  %v1696_v63 = vmul.f32 1.442695, %v4024_v56 }
 0x359   :  { %2096 = vst [vmem:[%s4265_s5 + $0x80] sm:$0xff] %v2032_v47 }
 0x35a   :  { %2872 = vpow2.f32 %v1696_v63  ;;  %1534 = vmax.xlane.f32.xlu2 %v4034_v17 }
 0x35b   :  { %1880 = vadd.xlane.f32.xlu1 %v2869_v29  ;;  %2874 = vpow2.f32 %v1748_v3 }
 0x35d   :  { %v1797_v49 = vpop.xlane.xlu1 %1796 }
 0x35e   :  { %v2871_v55 = vpop.eup %2870  ;;  %2876 = vlog2.f32 %v1797_v49 }
 0x35f   :  { %v1923_v14 = vmul.f32 0.6931472, %v2871_v55  ;;  %v1507_v60 = vpop.xlane.xlu0 %1506 }
 0x360   :  { %v4038_v53 = vsub.f32 %v3788_v24, %v1507_v60  ;;  %v2873_v38 = vpop.eup %2872 }
 0x361   :  { %v2033_v15 = vsub.f32 %v3759_v7, %v1923_v14  ;;  %v2875_v8 = vpop.eup %2874  ;;  %1824 = vadd.xlane.f32.xlu0 %v2873_v38 }
 0x362   :  { %v1698_v61 = vmul.f32 1.442695, %v4038_v53  ;;  %1876 = vadd.xlane.f32.xlu2 %v2875_v8 }
 0x363   :  { %2097 = vst [vmem:[%s4265_s5 + $0x88] sm:$0xff] %v2033_v15 }
 0x364   :  { %2878 = vpow2.f32 %v1698_v61  ;;  %v2877_v50 = vpop.eup %2876 }
 0x365   :  { %v1925_v33 = vmul.f32 0.6931472, %v2877_v50  ;;  %v1509_v42 = vpop.xlane.xlu1 %1508 }
 0x366   :  { %v4046_v9 = vsub.f32 %v3803_v57, %v1509_v42 }
 0x367   :  { %v2034_v24 = vsub.f32 %v3768_v5, %v1925_v33 }
 0x368   :  { %v1700_v7 = vmul.f32 1.442695, %v4046_v9 }
 0x369   :  { %2098 = vst [vmem:[%s4265_s5 + $0x90] sm:$0xff] %v2034_v24 }
 0x36a   :  { %v2879_v2 = vpop.eup %2878  ;;  %2880 = vpow2.f32 %v1700_v7 }
 0x36b   :  { %1826 = vadd.xlane.f32.xlu1 %v2879_v2 }
 0x36d   :  { %v1799_v32 = vpop.xlane.xlu2 %1798 }
 0x36e   :  { %2882 = vlog2.f32 %v1799_v32 }
 0x370   :  { %v2881_v40 = vpop.eup %2880 }
 0x371   :  { %1828 = vadd.xlane.f32.xlu2 %v2881_v40  ;;  %v1801_v48 = vpop.xlane.xlu0 %1800 }
 0x372   :  { %2884 = vlog2.f32 %v1801_v48 }
 0x374   :  { %v2883_v31 = vpop.eup %2882 }
 0x375   :  { %v1927_v57 = vmul.f32 0.6931472, %v2883_v31  ;;  %v1511_v59 = vpop.xlane.xlu2 %1510 }
 0x376   :  { %v4054_v5 = vsub.f32 %v3833_v52, %v1511_v59 }
 0x377   :  { %v2035_v23 = vsub.f32 %v3796_v6, %v1927_v57 }
 0x378   :  { %v2885_v43 = vpop.eup %2884  ;;  %v1702_v44 = vmul.f32 1.442695, %v4054_v5 }
 0x379   :  { %2099 = vst [vmem:[%s4265_s5 + $0x98] sm:$0xff] %v2035_v23  ;;  %v1929_v46 = vmul.f32 0.6931472, %v2885_v43  ;;  %v1513_v22 = vpop.xlane.xlu0 %1512 }
 0x37a   :  { %v1803_v0 = vpop.xlane.xlu1 %1802  ;;  %2886 = vpow2.f32 %v1702_v44  ;;  %v4062_v3 = vsub.f32 %v3842_v51, %v1513_v22 }
 0x37b   :  { %v2036_v47 = vsub.f32 %v3813_v58, %v1929_v46  ;;  %2888 = vlog2.f32 %v1803_v0 }
 0x37c   :  { %v1704_v52 = vmul.f32 1.442695, %v4062_v3 }
 0x37d   :  { %2100 = vst [vmem:[%s4265_s5 + $0xa0] sm:$0xff] %v2036_v47 }
 0x37e   :  { %2890 = vpow2.f32 %v1704_v52 }
 0x380   :  { %v2887_v6 = vpop.eup %2886 }
 0x381   :  { %v2889_v63 = vpop.eup %2888  ;;  %1830 = vadd.xlane.f32.xlu0 %v2887_v6 }
 0x382   :  { %v1515_v29 = vpop.xlane.xlu1 %1514  ;;  %v1931_v55 = vmul.f32 0.6931472, %v2889_v63 }
 0x383   :  { %v4070_v49 = vsub.f32 %v3865_v12, %v1515_v29 }
 0x384   :  { %v2891_v51 = vpop.eup %2890  ;;  %v2037_v14 = vsub.f32 %v3821_v34, %v1931_v55 }
 0x385   :  { %v1706_v58 = vmul.f32 1.442695, %v4070_v49  ;;  %v1805_v60 = vpop.xlane.xlu2 %1804  ;;  %1832 = vadd.xlane.f32.xlu1 %v2891_v51 }
 0x386   :  { %2101 = vst [vmem:[%s4265_s5 + $0xa8] sm:$0xff] %v2037_v14 }
 0x387   :  { %2892 = vpow2.f32 %v1706_v58 }
 0x388   :  { %2894 = vlog2.f32 %v1805_v60 }
 0x389   :  { %v1807_v38 = vpop.xlane.xlu0 %1806 }
 0x38a   :  { %2896 = vlog2.f32 %v1807_v38 }
 0x38d   :  { %v2893_v15 = vpop.eup %2892  ;;  %v1517_v61 = vpop.xlane.xlu2 %1516 }
 0x38e   :  { %v2895_v8 = vpop.eup %2894  ;;  %1834 = vadd.xlane.f32.xlu2 %v2893_v15  ;;  %v4078_v50 = vsub.f32 %v3887_v39, %v1517_v61 }
 0x38f   :  { %v1933_v12 = vmul.f32 0.6931472, %v2895_v8 }
 0x390   :  { %v2897_v34 = vpop.eup %2896  ;;  %v1708_v42 = vmul.f32 1.442695, %v4078_v50 }
 0x391   :  { %v2038_v33 = vsub.f32 %v3849_v19, %v1933_v12  ;;  %v1935_v24 = vmul.f32 0.6931472, %v2897_v34  ;;  %v1519_v2 = vpop.xlane.xlu0 %1518 }
 0x392   :  { %v1809_v7 = vpop.xlane.xlu1 %1808  ;;  %2898 = vpow2.f32 %v1708_v42  ;;  %v4086_v32 = vsub.f32 %v3896_v28, %v1519_v2 }
 0x393   :  { %2102 = vst [vmem:[%s4265_s5 + $0xb0] sm:$0xff] %v2038_v33  ;;  %v2039_v40 = vsub.f32 %v3858_v25, %v1935_v24  ;;  %2900 = vlog2.f32 %v1809_v7 }
 0x394   :  { %v1710_v39 = vmul.f32 1.442695, %v4086_v32 }
 0x395   :  { %2103 = vst [vmem:[%s4265_s5 + $0xb8] sm:$0xff] %v2039_v40 }
 0x396   :  { %2902 = vpow2.f32 %v1710_v39 }
 0x398   :  { %v2899_v19 = vpop.eup %2898 }
 0x399   :  { %v2901_v48 = vpop.eup %2900  ;;  %1836 = vadd.xlane.f32.xlu0 %v2899_v19 }
 0x39a   :  { %v1521_v31 = vpop.xlane.xlu1 %1520  ;;  %v1937_v57 = vmul.f32 0.6931472, %v2901_v48 }
 0x39b   :  { %v4094_v59 = vsub.f32 %v3919_v27, %v1521_v31 }
 0x39c   :  { %v2903_v28 = vpop.eup %2902  ;;  %v2040_v23 = vsub.f32 %v3875_v20, %v1937_v57 }
 0x39d   :  { %v1712_v25 = vmul.f32 1.442695, %v4094_v59  ;;  %v1811_v43 = vpop.xlane.xlu2 %1810  ;;  %1838 = vadd.xlane.f32.xlu1 %v2903_v28 }
 0x39e   :  { %2104 = vst [vmem:[%s4265_s5 + $0xc0] sm:$0xff] %v2040_v23 }
 0x39f   :  { %2904 = vpow2.f32 %v1712_v25 }
 0x3a0   :  { %2906 = vlog2.f32 %v1811_v43 }
 0x3a1   :  { %v1813_v44 = vpop.xlane.xlu0 %1812 }
 0x3a2   :  { %2908 = vlog2.f32 %v1813_v44 }
 0x3a5   :  { %v2905_v46 = vpop.eup %2904  ;;  %v1523_v22 = vpop.xlane.xlu2 %1522 }
 0x3a6   :  { %v2907_v0 = vpop.eup %2906  ;;  %1840 = vadd.xlane.f32.xlu2 %v2905_v46  ;;  %v4102_v47 = vsub.f32 %v3941_v18, %v1523_v22 }
 0x3a7   :  { %v1939_v27 = vmul.f32 0.6931472, %v2907_v0 }
 0x3a8   :  { %v2909_v20 = vpop.eup %2908  ;;  %v1714_v6 = vmul.f32 1.442695, %v4102_v47 }
 0x3a9   :  { %v2041_v52 = vsub.f32 %v3903_v30, %v1939_v27  ;;  %v1941_v63 = vmul.f32 0.6931472, %v2909_v20  ;;  %v1525_v55 = vpop.xlane.xlu0 %1524  ;;  %v4275_v27 = vld [vmem:[#allocation5_spill] sm:$0xff]  ;;  %v4276_v20 = vld [vmem:[#allocation2_spill] sm:$0xff] }
 0x3aa   :  { %v1815_v29 = vpop.xlane.xlu1 %1814  ;;  %2910 = vpow2.f32 %v1714_v6  ;;  %v4110_v51 = vsub.f32 %v3949_v13, %v1525_v55 }
 0x3ab   :  { %2105 = vst [vmem:[%s4265_s5 + $0xc8] sm:$0xff] %v2041_v52  ;;  %v2042_v14 = vsub.f32 %v3912_v1, %v1941_v63  ;;  %2912 = vlog2.f32 %v1815_v29  ;;  %v4153_v52 = vsub.f32 %v4276_v20, %v4275_v27 }
 0x3ac   :  { %v1716_v18 = vmul.f32 1.442695, %v4110_v51 }
 0x3ad   :  { %2106 = vst [vmem:[%s4265_s5 + $0xd0] sm:$0xff] %v2042_v14 }
 0x3ae   :  { %2914 = vpow2.f32 %v1716_v18 }
 0x3b0   :  { %v2911_v30 = vpop.eup %2910 }
 0x3b1   :  { %v2913_v58 = vpop.eup %2912  ;;  %1842 = vadd.xlane.f32.xlu0 %v2911_v30 }
 0x3b2   :  { %v1527_v60 = vpop.xlane.xlu1 %1526  ;;  %v1943_v38 = vmul.f32 0.6931472, %v2913_v58 }
 0x3b3   :  { %v4118_v15 = vsub.f32 %v3971_v54, %v1527_v60 }
 0x3b4   :  { %v2915_v13 = vpop.eup %2914  ;;  %v2043_v8 = vsub.f32 %v3929_v16, %v1943_v38 }
 0x3b5   :  { %v1718_v1 = vmul.f32 1.442695, %v4118_v15  ;;  %v1817_v61 = vpop.xlane.xlu2 %1816  ;;  %1844 = vadd.xlane.f32.xlu1 %v2915_v13 }
 0x3b6   :  { %2107 = vst [vmem:[%s4265_s5 + $0xd8] sm:$0xff] %v2043_v8  ;;  %v4277_v8 = vld [vmem:[#allocation6_spill] sm:$0xff] }
 0x3b7   :  { %2916 = vpow2.f32 %v1718_v1  ;;  %v1819_v12 = vpop.xlane.xlu0 %1818  ;;  %v4278_v1 = vld [vmem:[#allocation3_spill] sm:$0xff] }
 0x3b8   :  { %2918 = vlog2.f32 %v1817_v61  ;;  %v4170_v61 = vsub.f32 %v4278_v1, %v4277_v8 }
 0x3b9   :  { %2920 = vlog2.f32 %v1819_v12 }
 0x3bd   :  { %v2917_v34 = vpop.eup %2916  ;;  %v1529_v42 = vpop.xlane.xlu2 %1528 }
 0x3be   :  { %v2919_v33 = vpop.eup %2918  ;;  %1846 = vadd.xlane.f32.xlu2 %v2917_v34  ;;  %v1821_v54 = vpop.xlane.xlu1 %1820  ;;  %v4126_v16 = vsub.f32 %v3996_v37, %v1529_v42  ;;  %v4274_v37 = vld [vmem:[#allocation4_spill] sm:$0xff]  ;;  %v1756_v34 = vmul.f32 1.442695, %v4170_v61 }
 0x3bf   :  { %v2921_v24 = vpop.eup %2920  ;;  %v1945_v7 = vmul.f32 0.6931472, %v2919_v33  ;;  %2922 = vlog2.f32 %v1821_v54  ;;  %v1531_v2 = vpop.xlane.xlu0 %1530  ;;  %v4140_v28 = vsub.f32 %v4274_v37, %v3743_v11 }
 0x3c0   :  { %v1947_v40 = vmul.f32 0.6931472, %v2921_v24  ;;  %v4129_v39 = vsub.f32 %v4003_v45, %v1531_v2  ;;  %v1720_v48 = vmul.f32 1.442695, %v4126_v16 }
 0x3c1   :  { %v2044_v19 = vsub.f32 %v3953_v21, %v1945_v7  ;;  %v1758_v44 = vmul.f32 1.442695, %v4140_v28 }
 0x3c2   :  { %v2045_v31 = vsub.f32 %v3956_v36, %v1947_v40  ;;  %v1722_v57 = vmul.f32 1.442695, %v4129_v39  ;;  %2924 = vpow2.f32 %v1720_v48 }
 0x3c3   :  { %2108 = vst [vmem:[%s4265_s5 + $0xe0] sm:$0xff] %v2044_v19 }
 0x3c4   :  { %2109 = vst [vmem:[%s4265_s5 + $0xe8] sm:$0xff] %v2045_v31  ;;  %2926 = vpow2.f32 %v1722_v57 }
 0x3c5   :  { %v2923_v21 = vpop.eup %2922  ;;  %v1823_v23 = vpop.xlane.xlu2 %1822 }
 0x3c6   :  { %v1949_v45 = vmul.f32 0.6931472, %v2923_v21  ;;  %v1533_v36 = vpop.xlane.xlu1 %1532  ;;  %2928 = vlog2.f32 %v1823_v23 }
 0x3c7   :  { %v4146_v25 = vsub.f32 %v4015_v35, %v1533_v36  ;;  %v1879_v43 = vpop.xlane.xlu0 %1878 }
 0x3c8   :  { %v2046_v46 = vsub.f32 %v3975_v4, %v1949_v45  ;;  %2930 = vlog2.f32 %v1879_v43  ;;  %v2925_v11 = vpop.eup %2924  ;;  %v1754_v4 = vmul.f32 1.442695, %v4153_v52 }
 0x3c9   :  { %v1724_v0 = vmul.f32 1.442695, %v4146_v25  ;;  %1848 = vadd.xlane.f32.xlu0 %v2925_v11 }
 0x3ca   :  { %v2927_v22 = vpop.eup %2926  ;;  %2110 = vst [vmem:[%s4265_s5 + $0xf0] sm:$0xff] %v2046_v46 }
 0x3cb   :  { %2932 = vpow2.f32 %v1724_v0  ;;  %1850 = vadd.xlane.f32.xlu1 %v2927_v22 }
 0x3cc   :  { %2934 = vpow2.f32 %v1758_v44  ;;  %v2929_v35 = vpop.eup %2928 }
 0x3cd   :  { %v1951_v63 = vmul.f32 0.6931472, %v2929_v35  ;;  %v1535_v29 = vpop.xlane.xlu2 %1534 }
 0x3ce   :  { %v2931_v6 = vpop.eup %2930  ;;  %v1881_v55 = vpop.xlane.xlu1 %1880  ;;  %v4160_v18 = vsub.f32 %v4034_v17, %v1535_v29 }
 0x3cf   :  { %v2007_v14 = vmul.f32 0.6931472, %v2931_v6  ;;  %2936 = vlog2.f32 %v1881_v55  ;;  %v2047_v30 = vsub.f32 %v3989_v41, %v1951_v63 }
 0x3d0   :  { %v1726_v38 = vmul.f32 1.442695, %v4160_v18  ;;  %2938 = vpow2.f32 %v1754_v4 }
 0x3d1   :  { %v2933_v58 = vpop.eup %2932  ;;  %v2075_v60 = vsub.f32 %v3984_v26, %v2007_v14  ;;  %2111 = vst [vmem:[%s4265_s5 + $0xf8] sm:$0xff] %v2047_v30 }
 0x3d2   :  { %v2935_v13 = vpop.eup %2934  ;;  %1852 = vadd.xlane.f32.xlu2 %v2933_v58  ;;  %2940 = vpow2.f32 %v1726_v38 }
 0x3d3   :  { %2139 = vst [vmem:[%s4265_s5 + $0x1d8] sm:$0xff] %v2075_v60  ;;  %1886 = vadd.xlane.f32.xlu1 %v2935_v13 }
 0x3d4   :  { %v1825_v41 = vpop.xlane.xlu0 %1824 }
 0x3d5   :  { %v2937_v26 = vpop.eup %2936  ;;  %2942 = vlog2.f32 %v1825_v41  ;;  %v1877_v12 = vpop.xlane.xlu2 %1876 }
 0x3d6   :  { %v2009_v17 = vmul.f32 0.6931472, %v2937_v26  ;;  %2944 = vlog2.f32 %v1877_v12  ;;  %v2939_v33 = vpop.eup %2938 }
 0x3d7   :  { %2946 = vpow2.f32 %v1756_v34 }
 0x3d8   :  { %v2076_v42 = vsub.f32 %v4008_v10, %v2009_v17  ;;  %v2941_v54 = vpop.eup %2940 }
 0x3d9   :  { %1854 = vadd.xlane.f32.xlu0 %v2941_v54 }
 0x3da   :  { %2140 = vst [vmem:[%s4265_s5 + $0x1e0] sm:$0xff] %v2076_v42  ;;  %1882 = vadd.xlane.f32.xlu2 %v2939_v33 }
 0x3db   :  { %v2943_v24 = vpop.eup %2942 }
 0x3dc   :  { %v2945_v7 = vpop.eup %2944  ;;  %v1953_v2 = vmul.f32 0.6931472, %v2943_v24 }
 0x3dd   :  { %v2005_v40 = vmul.f32 0.6931472, %v2945_v7  ;;  %v2947_v57 = vpop.eup %2946 }
 0x3de   :  { %v1827_v19 = vpop.xlane.xlu1 %1826  ;;  %v2048_v48 = vsub.f32 %v4024_v56, %v1953_v2 }
 0x3df   :  { %2948 = vlog2.f32 %v1827_v19  ;;  %v2074_v31 = vsub.f32 %v4020_v62, %v2005_v40 }
 0x3e0   :  { %2112 = vst [vmem:[%s4265_s5 + $0x100] sm:$0xff] %v2048_v48 }
 0x3e1   :  { %2138 = vst [vmem:[%s4265_s5 + $0x1d0] sm:$0xff] %v2074_v31  ;;  %1884 = vadd.xlane.f32.xlu0 %v2947_v57 }
 0x3e4   :  { %v1829_v37 = vpop.xlane.xlu2 %1828 }
 0x3e5   :  { %v2949_v10 = vpop.eup %2948  ;;  %2950 = vlog2.f32 %v1829_v37 }
 0x3e6   :  { %v1955_v21 = vmul.f32 0.6931472, %v2949_v10 }
 0x3e8   :  { %v2049_v45 = vsub.f32 %v4038_v53, %v1955_v21 }
 0x3ea   :  { %2113 = vst [vmem:[%s4265_s5 + $0x108] sm:$0xff] %v2049_v45 }
 0x3eb   :  { %v2951_v62 = vpop.eup %2950 }
 0x3ec   :  { %v1957_v56 = vmul.f32 0.6931472, %v2951_v62 }
 0x3ee   :  { %v2050_v23 = vsub.f32 %v4046_v9, %v1957_v56 }
 0x3f0   :  { %2114 = vst [vmem:[%s4265_s5 + $0x110] sm:$0xff] %v2050_v23 }
 0x3f4   :  { %v1831_v36 = vpop.xlane.xlu0 %1830 }
 0x3f5   :  { %2952 = vlog2.f32 %v1831_v36 }
 0x3f8   :  { %v1833_v43 = vpop.xlane.xlu1 %1832 }
 0x3f9   :  { %2954 = vlog2.f32 %v1833_v43 }
 0x3fb   :  { %v2953_v44 = vpop.eup %2952 }
 0x3fc   :  { %v1959_v46 = vmul.f32 0.6931472, %v2953_v44 }
 0x3fe   :  { %v2051_v53 = vsub.f32 %v4054_v5, %v1959_v46 }
 0x3ff   :  { %v2955_v11 = vpop.eup %2954 }
 0x400   :  { %2115 = vst [vmem:[%s4265_s5 + $0x118] sm:$0xff] %v2051_v53  ;;  %v1961_v0 = vmul.f32 0.6931472, %v2955_v11 }
 0x401   :  { %v1835_v22 = vpop.xlane.xlu2 %1834 }
 0x402   :  { %2956 = vlog2.f32 %v1835_v22  ;;  %v2052_v9 = vsub.f32 %v4062_v3, %v1961_v0 }
 0x404   :  { %2116 = vst [vmem:[%s4265_s5 + $0x120] sm:$0xff] %v2052_v9 }
 0x408   :  { %v2957_v27 = vpop.eup %2956 }
 0x409   :  { %v1963_v20 = vmul.f32 0.6931472, %v2957_v27 }
 0x40b   :  { %v2053_v35 = vsub.f32 %v4070_v49, %v1963_v20 }
 0x40c   :  { %v1837_v5 = vpop.xlane.xlu0 %1836 }
 0x40d   :  { %2117 = vst [vmem:[%s4265_s5 + $0x128] sm:$0xff] %v2053_v35  ;;  %2958 = vlog2.f32 %v1837_v5 }
 0x410   :  { %v1839_v6 = vpop.xlane.xlu1 %1838 }
 0x411   :  { %2960 = vlog2.f32 %v1839_v6 }
 0x413   :  { %v2959_v4 = vpop.eup %2958 }
 0x414   :  { %v1965_v63 = vmul.f32 0.6931472, %v2959_v4 }
 0x416   :  { %v2054_v3 = vsub.f32 %v4078_v50, %v1965_v63 }
 0x417   :  { %v2961_v29 = vpop.eup %2960 }
 0x418   :  { %2118 = vst [vmem:[%s4265_s5 + $0x130] sm:$0xff] %v2054_v3  ;;  %v1967_v55 = vmul.f32 0.6931472, %v2961_v29 }
 0x419   :  { %v1841_v14 = vpop.xlane.xlu2 %1840 }
 0x41a   :  { %2962 = vlog2.f32 %v1841_v14  ;;  %v2055_v49 = vsub.f32 %v4086_v32, %v1967_v55 }
 0x41c   :  { %2119 = vst [vmem:[%s4265_s5 + $0x138] sm:$0xff] %v2055_v49 }
 0x420   :  { %v2963_v30 = vpop.eup %2962 }
 0x421   :  { %v1969_v58 = vmul.f32 0.6931472, %v2963_v30 }
 0x423   :  { %v2056_v60 = vsub.f32 %v4094_v59, %v1969_v58 }
 0x424   :  { %v1843_v50 = vpop.xlane.xlu0 %1842 }
 0x425   :  { %2120 = vst [vmem:[%s4265_s5 + $0x140] sm:$0xff] %v2056_v60  ;;  %2964 = vlog2.f32 %v1843_v50 }
 0x428   :  { %v1845_v38 = vpop.xlane.xlu1 %1844 }
 0x429   :  { %2966 = vlog2.f32 %v1845_v38 }
 0x42b   :  { %v2965_v13 = vpop.eup %2964 }
 0x42c   :  { %v1971_v8 = vmul.f32 0.6931472, %v2965_v13 }
 0x42e   :  { %v2057_v32 = vsub.f32 %v4102_v47, %v1971_v8 }
 0x42f   :  { %v2967_v1 = vpop.eup %2966 }
 0x430   :  { %2121 = vst [vmem:[%s4265_s5 + $0x148] sm:$0xff] %v2057_v32  ;;  %v1973_v26 = vmul.f32 0.6931472, %v2967_v1 }
 0x431   :  { %v1847_v41 = vpop.xlane.xlu2 %1846 }
 0x432   :  { %2968 = vlog2.f32 %v1847_v41  ;;  %v2058_v59 = vsub.f32 %v4110_v51, %v1973_v26 }
 0x434   :  { %2122 = vst [vmem:[%s4265_s5 + $0x150] sm:$0xff] %v2058_v59 }
 0x438   :  { %v2969_v17 = vpop.eup %2968 }
 0x439   :  { %v1975_v12 = vmul.f32 0.6931472, %v2969_v17 }
 0x43b   :  { %v2059_v34 = vsub.f32 %v4118_v15, %v1975_v12 }
 0x43c   :  { %v1849_v47 = vpop.xlane.xlu0 %1848 }
 0x43d   :  { %2123 = vst [vmem:[%s4265_s5 + $0x158] sm:$0xff] %v2059_v34  ;;  %2970 = vlog2.f32 %v1849_v47 }
 0x43e   :  { %v1851_v33 = vpop.xlane.xlu1 %1850 }
 0x43f   :  { %2972 = vlog2.f32 %v1851_v33 }
 0x443   :  { %v2971_v42 = vpop.eup %2970 }
 0x444   :  { %v1977_v24 = vmul.f32 0.6931472, %v2971_v42 }
 0x445   :  { %v2973_v54 = vpop.eup %2972  ;;  %v1853_v51 = vpop.xlane.xlu2 %1852 }
 0x446   :  { %v1979_v7 = vmul.f32 0.6931472, %v2973_v54  ;;  %2974 = vlog2.f32 %v1853_v51  ;;  %v1887_v2 = vpop.xlane.xlu1 %1886  ;;  %v2060_v40 = vsub.f32 %v4126_v16, %v1977_v24 }
 0x447   :  { %2976 = vlog2.f32 %v1887_v2 }
 0x448   :  { %v2061_v15 = vsub.f32 %v4129_v39, %v1979_v7  ;;  %2124 = vst [vmem:[%s4265_s5 + $0x160] sm:$0xff] %v2060_v40 }
 0x44a   :  { %2125 = vst [vmem:[%s4265_s5 + $0x168] sm:$0xff] %v2061_v15 }
 0x44c   :  { %v2975_v19 = vpop.eup %2974  ;;  %v1855_v10 = vpop.xlane.xlu0 %1854 }
 0x44d   :  { %v2977_v48 = vpop.eup %2976  ;;  %v1981_v31 = vmul.f32 0.6931472, %v2975_v19  ;;  %v1883_v57 = vpop.xlane.xlu2 %1882 }
 0x44e   :  { %v2015_v37 = vmul.f32 0.6931472, %v2977_v48  ;;  %2978 = vlog2.f32 %v1883_v57 }
 0x44f   :  { %v2062_v16 = vsub.f32 %v4146_v25, %v1981_v31  ;;  %2980 = vlog2.f32 %v1855_v10 }
 0x450   :  { %v2079_v39 = vsub.f32 %v4140_v28, %v2015_v37 }
 0x451   :  { %2126 = vst [vmem:[%s4265_s5 + $0x170] sm:$0xff] %v2062_v16 }
 0x452   :  { %2143 = vst [vmem:[%s4265_s5 + $0x1f8] sm:$0xff] %v2079_v39 }
 0x454   :  { %v2979_v21 = vpop.eup %2978  ;;  %v1885_v56 = vpop.xlane.xlu0 %1884 }
 0x455   :  { %v2981_v45 = vpop.eup %2980  ;;  %v2011_v62 = vmul.f32 0.6931472, %v2979_v21  ;;  %2982 = vlog2.f32 %v1885_v56 }
 0x456   :  { %v1983_v23 = vmul.f32 0.6931472, %v2981_v45 }
 0x457   :  { %v2077_v36 = vsub.f32 %v4153_v52, %v2011_v62 }
 0x458   :  { %v2063_v25 = vsub.f32 %v4160_v18, %v1983_v23 }
 0x459   :  { %2141 = vst [vmem:[%s4265_s5 + $0x1e8] sm:$0xff] %v2077_v36 }
 0x45a   :  { %2127 = vst [vmem:[%s4265_s5 + $0x178] sm:$0xff] %v2063_v25 }
 0x45b   :  { %v2983_v28 = vpop.eup %2982 }
 0x45c   :  { %v2013_v43 = vmul.f32 0.6931472, %v2983_v28 }
 0x45e   :  { %v2078_v44 = vsub.f32 %v4170_v61, %v2013_v43 }
 0x460   :  { %2142 = vst [vmem:[%s4265_s5 + $0x1f0] sm:$0xff] %v2078_v44 }

</bundles_post_ra>
